<compile_context>
chip_gen: v7x
topology: tpu7x:2x2x1
jax: 0.10.0
libtpu: 0.0.40
codegen_flags: <defaults>
</compile_context>

<pallas_src>
import functools
import math

import jax
import jax.numpy as jnp
from jax import lax
from jax.experimental import pallas as pl
from jax.experimental.pallas import tpu as pltpu

LN_EPS = 1e-5  # F.layer_norm default eps


# ---------------------------------------------------------------------------
# helpers (used both in-kernel and in the pure-JAX reference)
# ---------------------------------------------------------------------------
def _layer_norm(x, gamma, beta):
    # F.layer_norm over the last dim (population variance), computed in f32.
    mu = jnp.mean(x, axis=-1, keepdims=True)
    var = jnp.mean((x - mu) ** 2, axis=-1, keepdims=True)
    return (x - mu) * lax.rsqrt(var + LN_EPS) * gamma + beta


def _gelu_exact(x):
    # PyTorch F.gelu default is the exact erf-based GELU.
    return 0.5 * x * (1.0 + lax.erf(x * (1.0 / math.sqrt(2.0))))


# ---------------------------------------------------------------------------
# Fused per-(batch-block, layer) kernel:
#   pre-LN MHA + residual  ->  GEGLU FF + residual, carried in VMEM per layer.
# ---------------------------------------------------------------------------
def _layer_kernel(x_ref, ga_ref, ba_ref, wqkv_ref, wo_ref,
                  g1_ref, b1_ref, w1_ref, g2_ref, b2_ref, w2_ref,
                  o_ref, feats_sc, attn_sc,
                  *, batch_block, seq, heads, dim_head, inner):
    l = pl.program_id(1)
    HD = heads * dim_head

    # Load feats into the VMEM carry only at the first layer of this block.
    @pl.when(l == 0)
    def _():
        feats_sc[...] = x_ref[...].astype(jnp.float32)

    x = feats_sc[...]                                            # (Bblk*N, D) f32

    # ---------------- attention (+ fused residual) ----------------
    xn = _layer_norm(x, ga_ref[...], ba_ref[...])                # (Bblk*N, D)
    # One wide bf16 MXU matmul for all of Q, K, V over all heads (scale is
    # folded into the Q columns of wqkv on the host).
    qkv = jnp.dot(xn.astype(jnp.bfloat16), wqkv_ref[...],
                  preferred_element_type=jnp.float32)            # (Bblk*N, 3*HD)

    # Statically unrolled per (batch element, head) attention; each head's
    # output lands directly at its lane offset in attn_sc (no concatenate).
    for b in range(batch_block):
        r0 = b * seq
        for h in range(heads):
            c0 = h * dim_head
            q = qkv[r0:r0 + seq, c0:c0 + dim_head].astype(jnp.bfloat16)
            k = qkv[r0:r0 + seq, HD + c0:HD + c0 + dim_head].astype(jnp.bfloat16)
            v = qkv[r0:r0 + seq, 2 * HD + c0:2 * HD + c0 + dim_head]
            # q @ k^T without materializing a transpose.
            s = lax.dot_general(q, k, (((1,), (1,)), ((), ())),
                                preferred_element_type=jnp.float32)  # (N, N)
            s = s - jnp.max(s, axis=-1, keepdims=True)
            e = jnp.exp(s)
            p = e / jnp.sum(e, axis=-1, keepdims=True)               # exact softmax
            pv = jnp.dot(p.astype(jnp.bfloat16), v.astype(jnp.bfloat16),
                         preferred_element_type=jnp.float32)         # (N, dh)
            attn_sc[r0:r0 + seq, c0:c0 + dim_head] = pv

    # Single wide output projection over all heads / all batch elements.
    x = x + jnp.dot(attn_sc[...].astype(jnp.bfloat16), wo_ref[...],
                    preferred_element_type=jnp.float32)

    # ---------------- feed-forward (GEGLU) (+ fused residual) ------
    xn = _layer_norm(x, g1_ref[...], b1_ref[...])                # (Bblk*N, D)
    h12 = jnp.dot(xn.astype(jnp.bfloat16), w1_ref[...],
                  preferred_element_type=jnp.float32)            # (Bblk*N, 2*inner)
    hgl = h12[:, :inner] * _gelu_exact(h12[:, inner:])           # GEGLU
    hn = _layer_norm(hgl, g2_ref[...], b2_ref[...])              # (Bblk*N, inner)
    # Dropout(p=0) is a no-op.
    x = x + jnp.dot(hn.astype(jnp.bfloat16), w2_ref[...],
                    preferred_element_type=jnp.float32)

    feats_sc[...] = x

    @pl.when(l == pl.num_programs(1) - 1)
    def _():
        o_ref[...] = x.astype(o_ref.dtype)


def lorentz_transformer(feats, coors, params, *, heads, dim_head,
                        batch_block=None):
    B, N, D = feats.shape
    depth = params["wqkv"].shape[0]
    HD = heads * dim_head
    inner = params["w2"].shape[1]

    if batch_block is None:
        batch_block = 1
        for cand in (8, 4, 2, 1):          # largest divisor of B up to 8
            if B % cand == 0:
                batch_block = cand
                break
    assert B % batch_block == 0
    rows = batch_block * N                  # rows per grid step (keep % 8 == 0)

    feats2d = feats.reshape(B * N, D)       # lane-dense 2-D activation slab

    kernel = functools.partial(_layer_kernel, batch_block=batch_block, seq=N,
                               heads=heads, dim_head=dim_head, inner=inner)

    def wspec(d0, d1):
        # per-layer weight tile, depth-indexed; leading dim squeezed -> 2-D ref
        return pl.BlockSpec((None, d0, d1), lambda b, l: (l, 0, 0))

    out2d = pl.pallas_call(
        kernel,
        out_shape=jax.ShapeDtypeStruct((B * N, D), feats.dtype),
        grid=(B // batch_block, depth),
        in_specs=[
            pl.BlockSpec((rows, D), lambda b, l: (b, 0)),      # feats
            wspec(1, D),                                       # attn LN gamma
            wspec(1, D),                                       # attn LN beta
            wspec(D, 3 * HD),                                  # packed Wqkv (bf16)
            wspec(HD, D),                                      # Wout (bf16)
            wspec(1, D),                                       # ff LN1 gamma
            wspec(1, D),                                       # ff LN1 beta
            wspec(D, 2 * inner),                               # packed W1 (bf16)
            wspec(1, inner),                                   # ff LN2 gamma
            wspec(1, inner),                                   # ff LN2 beta
            wspec(inner, D),                                   # W2 (bf16)
        ],
        out_specs=pl.BlockSpec((rows, D), lambda b, l: (b, 0)),
        scratch_shapes=[pltpu.VMEM((rows, D), jnp.float32),    # feats carry
                        pltpu.VMEM((rows, HD), jnp.float32)],  # head outputs
        compiler_params=pltpu.CompilerParams(
            dimension_semantics=("parallel", "arbitrary"),
            vmem_limit_bytes=48 * 1024 * 1024),
    )(feats2d, params["g_a"], params["b_a"], params["wqkv"], params["wo"],
      params["g1"], params["b1"], params["w1"],
      params["g2"], params["b2"], params["w2"])

    # coors: FeedForward residual adds 0; stand-in attention adds 0 (TODO above).
    return out2d.reshape(B, N, D), coors


# ---------------------------------------------------------------------------
# Pure-JAX reference (same math on the same packed weights, f32, no Pallas).
# ---------------------------------------------------------------------------
def _reference(feats, coors, p, *, heads, dim_head):
    B, N, D = feats.shape
    depth = p["wqkv"].shape[0]
    HD = heads * dim_head
    inner = p["w2"].shape[1]
    wqkv = p["wqkv"].astype(jnp.float32)
    wo = p["wo"].astype(jnp.float32)
    w1 = p["w1"].astype(jnp.float32)
    w2 = p["w2"].astype(jnp.float32)

    x = feats.astype(jnp.float32)
    for l in range(depth):
        xn = _layer_norm(x, p["g_a"][l], p["b_a"][l])
        qkv = jnp.einsum("bnd,de->bne", xn, wqkv[l])
        q = qkv[..., :HD].reshape(B, N, heads, dim_head)
        k = qkv[..., HD:2 * HD].reshape(B, N, heads, dim_head)
        v = qkv[..., 2 * HD:].reshape(B, N, heads, dim_head)
        s = jnp.einsum("bnhd,bmhd->bhnm", q, k)   # scale already folded into Wq
        a = jax.nn.softmax(s, axis=-1)
        o = jnp.einsum("bhnm,bmhd->bnhd", a, v).reshape(B, N, HD)
        x = x + jnp.einsum("bne,ed->bnd", o, wo[l])

        xn = _layer_norm(x, p["g1"][l], p["b1"][l])
        h12 = jnp.einsum("bnd,de->bne", xn, w1[l])
        g = h12[..., :inner] * _gelu_exact(h12[..., inner:])
        gn = _layer_norm(g, p["g2"][l], p["b2"][l])
        x = x + jnp.einsum("bne,ed->bnd", gn, w2[l])
    return x.astype(feats.dtype), coors


# ---------------------------------------------------------------------------
# Deterministic parameters (shapes follow the module __init__), pre-packed on
# the host into the flattened bf16 layouts the kernel wants.  The 1/sqrt(dh)
# attention scale is folded into the Q columns of Wqkv here (one-time host
# transform), so the kernel does no per-element scale multiply.
# ---------------------------------------------------------------------------
def init_params(key, *, dim, depth, heads, dim_head):
    inner = int(dim * 4 * 2 / 3)        # FeedForward inner_dim, mult = 4
    HD = heads * dim_head
    scale = dim_head ** -0.5
    k0, k1, k2, k3 = jax.random.split(key, 4)

    wqkv = 0.02 * jax.random.normal(k0, (depth, dim, 3 * HD), jnp.float32)
    wqkv = wqkv.at[:, :, :HD].multiply(scale)   # fold softmax scale into Q

    return dict(
        g_a=jnp.ones((depth, 1, dim), jnp.float32),
        b_a=jnp.zeros((depth, 1, dim), jnp.float32),
        # q/k/v projections packed head-major into one (D, 3*H*dh) bf16 matrix
        wqkv=wqkv.astype(jnp.bfloat16),
        wo=(0.02 * jax.random.normal(k1, (depth, HD, dim), jnp.float32)
            ).astype(jnp.bfloat16),
        g1=jnp.ones((depth, 1, dim), jnp.float32),
        b1=jnp.zeros((depth, 1, dim), jnp.float32),
        # nn.Linear(dim, inner*2, bias=False): value half | gate half
        w1=(0.02 * jax.random.normal(k2, (depth, dim, 2 * inner), jnp.float32)
            ).astype(jnp.bfloat16),
        g2=jnp.ones((depth, 1, inner), jnp.float32),
        b2=jnp.zeros((depth, 1, inner), jnp.float32),
        # nn.Linear(inner, dim, bias=False)
        w2=(0.02 * jax.random.normal(k3, (depth, inner, dim), jnp.float32)
            ).astype(jnp.bfloat16),
    )


if __name__ == "__main__":
    # Small but lane-friendly shapes: D multiple of 128, dim_head = 128 so
    # every per-head q/k/v slice starts on a 128-lane boundary, N multiple of 8.
    B, N, D = 2, 16, 128
    heads, dim_head, depth = 2, 128, 2     # dim_head >= 32 (module assertion)

    key = jax.random.PRNGKey(0)
    kf, kc = jax.random.split(key)
    feats = jax.random.normal(kf, (B, N, D), dtype=jnp.float32)
    coors = jax.random.normal(kc, (B, N, 4), dtype=jnp.float32)

    params = init_params(jax.random.PRNGKey(1), dim=D, depth=depth,
                         heads=heads, dim_head=dim_head)

    out_feats, out_coors = lorentz_transformer(feats, coors, params,
                                               heads=heads, dim_head=dim_head)
    jax.block_until_ready((out_feats, out_coors))

    ref_feats, ref_coors = _reference(feats, coors, params,
                                      heads=heads, dim_head=dim_head)
    assert out_feats.shape == (B, N, D) and out_coors.shape == (B, N, 4)
    # bf16 MXU inputs with f32 accumulation -> small rounding vs f32 reference
    assert jnp.allclose(out_feats, ref_feats, atol=2e-2, rtol=2e-2)
    assert jnp.allclose(out_coors, ref_coors, atol=1e-6)

    print("KERNEL_OK")
</pallas_src>

<mosaic_0001>
module attributes {stable_mosaic.version = 11 : i64} {
  func.func @_layer_kernel(%arg0: i32, %arg1: i32, %arg2: memref<32x128xf32, #tpu.memory_space<vmem>>, %arg3: memref<1x1x128xf32, #tpu.memory_space<vmem>>, %arg4: memref<1x1x128xf32, #tpu.memory_space<vmem>>, %arg5: memref<1x128x768xbf16, #tpu.memory_space<vmem>>, %arg6: memref<1x256x128xbf16, #tpu.memory_space<vmem>>, %arg7: memref<1x1x128xf32, #tpu.memory_space<vmem>>, %arg8: memref<1x1x128xf32, #tpu.memory_space<vmem>>, %arg9: memref<1x128x682xbf16, #tpu.memory_space<vmem>>, %arg10: memref<1x1x341xf32, #tpu.memory_space<vmem>>, %arg11: memref<1x1x341xf32, #tpu.memory_space<vmem>>, %arg12: memref<1x341x128xbf16, #tpu.memory_space<vmem>>, %arg13: memref<32x128xf32, #tpu.memory_space<vmem>>, %arg14: memref<32x128xf32, #tpu.memory_space<vmem>>, %arg15: memref<32x256xf32, #tpu.memory_space<vmem>>) attributes {dimension_semantics = [#tpu.dimension_semantics<parallel>, #tpu.dimension_semantics<arbitrary>], iteration_bounds = array<i64: 1, 2>, scalar_prefetch = 0 : i64, scratch_operands = 2 : i64, tpu.core_type = #tpu.core_type<tc>, window_params = [{transform_indices = @transform_0, window_bounds = array<i64: 32, 128>}, {transform_indices = @transform_1, window_bounds = array<i64: 1, 1, 128>}, {transform_indices = @transform_2, window_bounds = array<i64: 1, 1, 128>}, {transform_indices = @transform_3, window_bounds = array<i64: 1, 128, 768>}, {transform_indices = @transform_4, window_bounds = array<i64: 1, 256, 128>}, {transform_indices = @transform_5, window_bounds = array<i64: 1, 1, 128>}, {transform_indices = @transform_6, window_bounds = array<i64: 1, 1, 128>}, {transform_indices = @transform_7, window_bounds = array<i64: 1, 128, 682>}, {transform_indices = @transform_8, window_bounds = array<i64: 1, 1, 341>}, {transform_indices = @transform_9, window_bounds = array<i64: 1, 1, 341>}, {transform_indices = @transform_10, window_bounds = array<i64: 1, 341, 128>}, {transform_indices = @transform_11, window_bounds = array<i64: 32, 128>}]} {
    %c0_i32 = arith.constant 0 : i32
    %0 = arith.cmpi eq, %arg1, %c0_i32 : i32
    %1 = arith.extui %0 : i1 to i32
    %c0_i32_0 = arith.constant 0 : i32
    %2 = arith.cmpi ne, %1, %c0_i32_0 : i32
    scf.if %2 {
      %c0_80 = arith.constant 0 : index
      %c0_81 = arith.constant 0 : index
      %192 = vector.load %arg2[%c0_80, %c0_81] : memref<32x128xf32, #tpu.memory_space<vmem>>, vector<32x128xf32>
      %c0_82 = arith.constant 0 : index
      %c0_83 = arith.constant 0 : index
      %193 = vector.load %arg14[%c0_82, %c0_83] : memref<32x128xf32, #tpu.memory_space<vmem>>, vector<32x128xf32>
      tpu.vector_store %arg14[%c0_82, %c0_83], %192 {strides = array<i32>} : memref<32x128xf32, #tpu.memory_space<vmem>>, vector<32x128xf32>,
    } else {
    }
    %c0 = arith.constant 0 : index
    %c0_1 = arith.constant 0 : index
    %3 = vector.load %arg14[%c0, %c0_1] : memref<32x128xf32, #tpu.memory_space<vmem>>, vector<32x128xf32>
    %c0_2 = arith.constant 0 : index
    %c0_3 = arith.constant 0 : index
    %c0_4 = arith.constant 0 : index
    %4 = vector.load %arg3[%c0_2, %c0_3, %c0_4] : memref<1x1x128xf32, #tpu.memory_space<vmem>>, vector<1x1x128xf32>
    %5 = vector.shape_cast %4 : vector<1x1x128xf32> to vector<1x128xf32>
    %c0_5 = arith.constant 0 : index
    %c0_6 = arith.constant 0 : index
    %c0_7 = arith.constant 0 : index
    %6 = vector.load %arg4[%c0_5, %c0_6, %c0_7] : memref<1x1x128xf32, #tpu.memory_space<vmem>>, vector<1x1x128xf32>
    %7 = vector.shape_cast %6 : vector<1x1x128xf32> to vector<1x128xf32>
    %cst = arith.constant dense<0.000000e+00> : vector<32xf32>
    %8 = vector.multi_reduction <add>, %3, %cst [1] : vector<32x128xf32> to vector<32xf32>
    %9 = vector.shape_cast %8 : vector<32xf32> to vector<32x1xf32>
    %cst_8 = arith.constant 1.280000e+02 : f32
    %10 = vector.broadcast %cst_8 : f32 to vector<32x1xf32>
    %11 = arith.divf %9, %10 : vector<32x1xf32>
    %12 = vector.broadcast %11 : vector<32x1xf32> to vector<32x128xf32>
    %13 = arith.subf %3, %12 : vector<32x128xf32>
    %14 = arith.mulf %13, %13 : vector<32x128xf32>
    %cst_9 = arith.constant dense<0.000000e+00> : vector<32xf32>
    %15 = vector.multi_reduction <add>, %14, %cst_9 [1] : vector<32x128xf32> to vector<32xf32>
    %16 = vector.shape_cast %15 : vector<32xf32> to vector<32x1xf32>
    %cst_10 = arith.constant 1.280000e+02 : f32
    %17 = vector.broadcast %cst_10 : f32 to vector<32x1xf32>
    %18 = arith.divf %16, %17 : vector<32x1xf32>
    %19 = vector.broadcast %11 : vector<32x1xf32> to vector<32x128xf32>
    %20 = arith.subf %3, %19 : vector<32x128xf32>
    %cst_11 = arith.constant 9.99999974E-6 : f32
    %21 = vector.broadcast %cst_11 : f32 to vector<32x1xf32>
    %22 = arith.addf %18, %21 : vector<32x1xf32>
    %23 = math.rsqrt %22 : vector<32x1xf32>
    %24 = vector.broadcast %23 : vector<32x1xf32> to vector<32x128xf32>
    %25 = arith.mulf %20, %24 : vector<32x128xf32>
    %26 = vector.broadcast %5 : vector<1x128xf32> to vector<32x128xf32>
    %27 = arith.mulf %25, %26 : vector<32x128xf32>
    %28 = vector.broadcast %7 : vector<1x128xf32> to vector<32x128xf32>
    %29 = arith.addf %27, %28 : vector<32x128xf32>
    %30 = arith.truncf %29 : vector<32x128xf32> to vector<32x128xbf16>
    %c0_12 = arith.constant 0 : index
    %c0_13 = arith.constant 0 : index
    %c0_14 = arith.constant 0 : index
    %31 = vector.load %arg5[%c0_12, %c0_13, %c0_14] : memref<1x128x768xbf16, #tpu.memory_space<vmem>>, vector<1x128x768xbf16>
    %32 = vector.shape_cast %31 : vector<1x128x768xbf16> to vector<128x768xbf16>
    %cst_15 = arith.constant dense<0.000000e+00> : vector<32x768xf32>
    %33 = tpu.matmul %30, %32, %cst_15 {dimension_numbers = #tpu.dot_dimension_numbers<[1], [0], [0], [1], [0, 0, 1, 1], [], []>} : vector<32x128xbf16>, vector<128x768xbf16>, vector<32x768xf32> -> vector<32x768xf32>
    %34 = vector.extract_strided_slice %33 {offsets = [0, 0], sizes = [16, 128], strides = [1, 1]} : vector<32x768xf32> to vector<16x128xf32>
    %35 = arith.truncf %34 : vector<16x128xf32> to vector<16x128xbf16>
    %36 = vector.extract_strided_slice %33 {offsets = [0, 256], sizes = [16, 128], strides = [1, 1]} : vector<32x768xf32> to vector<16x128xf32>
    %37 = arith.truncf %36 : vector<16x128xf32> to vector<16x128xbf16>
    %38 = vector.extract_strided_slice %33 {offsets = [0, 512], sizes = [16, 128], strides = [1, 1]} : vector<32x768xf32> to vector<16x128xf32>
    %cst_16 = arith.constant dense<0.000000e+00> : vector<16x16xf32>
    %39 = tpu.matmul %35, %37, %cst_16 {dimension_numbers = #tpu.dot_dimension_numbers<[1], [1], [0], [0], [0, 0, 1, 0], [], []>} : vector<16x128xbf16>, vector<16x128xbf16>, vector<16x16xf32> -> vector<16x16xf32>
    %cst_17 = arith.constant dense<0xFF800000> : vector<16xf32>
    %40 = vector.multi_reduction <maximumf>, %39, %cst_17 [1] : vector<16x16xf32> to vector<16xf32>
    %41 = vector.shape_cast %40 : vector<16xf32> to vector<16x1xf32>
    %42 = vector.broadcast %41 : vector<16x1xf32> to vector<16x16xf32>
    %43 = arith.subf %39, %42 : vector<16x16xf32>
    %44 = math.exp %43 : vector<16x16xf32>
    %cst_18 = arith.constant dense<0.000000e+00> : vector<16xf32>
    %45 = vector.multi_reduction <add>, %44, %cst_18 [1] : vector<16x16xf32> to vector<16xf32>
    %46 = vector.shape_cast %45 : vector<16xf32> to vector<16x1xf32>
    %47 = vector.broadcast %46 : vector<16x1xf32> to vector<16x16xf32>
    %48 = arith.divf %44, %47 : vector<16x16xf32>
    %49 = arith.truncf %48 : vector<16x16xf32> to vector<16x16xbf16>
    %50 = arith.truncf %38 : vector<16x128xf32> to vector<16x128xbf16>
    %cst_19 = arith.constant dense<0.000000e+00> : vector<16x128xf32>
    %51 = tpu.matmul %49, %50, %cst_19 {dimension_numbers = #tpu.dot_dimension_numbers<[1], [0], [0], [1], [0, 0, 1, 1], [], []>} : vector<16x16xbf16>, vector<16x128xbf16>, vector<16x128xf32> -> vector<16x128xf32>
    %c0_20 = arith.constant 0 : index
    %c0_21 = arith.constant 0 : index
    %52 = vector.load %arg15[%c0_20, %c0_21] : memref<32x256xf32, #tpu.memory_space<vmem>>, vector<16x128xf32>
    tpu.vector_store %arg15[%c0_20, %c0_21], %51 {strides = array<i32>} : memref<32x256xf32, #tpu.memory_space<vmem>>, vector<16x128xf32>,
    %53 = vector.extract_strided_slice %33 {offsets = [0, 128], sizes = [16, 128], strides = [1, 1]} : vector<32x768xf32> to vector<16x128xf32>
    %54 = arith.truncf %53 : vector<16x128xf32> to vector<16x128xbf16>
    %55 = vector.extract_strided_slice %33 {offsets = [0, 384], sizes = [16, 128], strides = [1, 1]} : vector<32x768xf32> to vector<16x128xf32>
    %56 = arith.truncf %55 : vector<16x128xf32> to vector<16x128xbf16>
    %57 = vector.extract_strided_slice %33 {offsets = [0, 640], sizes = [16, 128], strides = [1, 1]} : vector<32x768xf32> to vector<16x128xf32>
    %cst_22 = arith.constant dense<0.000000e+00> : vector<16x16xf32>
    %58 = tpu.matmul %54, %56, %cst_22 {dimension_numbers = #tpu.dot_dimension_numbers<[1], [1], [0], [0], [0, 0, 1, 0], [], []>} : vector<16x128xbf16>, vector<16x128xbf16>, vector<16x16xf32> -> vector<16x16xf32>
    %cst_23 = arith.constant dense<0xFF800000> : vector<16xf32>
    %59 = vector.multi_reduction <maximumf>, %58, %cst_23 [1] : vector<16x16xf32> to vector<16xf32>
    %60 = vector.shape_cast %59 : vector<16xf32> to vector<16x1xf32>
    %61 = vector.broadcast %60 : vector<16x1xf32> to vector<16x16xf32>
    %62 = arith.subf %58, %61 : vector<16x16xf32>
    %63 = math.exp %62 : vector<16x16xf32>
    %cst_24 = arith.constant dense<0.000000e+00> : vector<16xf32>
    %64 = vector.multi_reduction <add>, %63, %cst_24 [1] : vector<16x16xf32> to vector<16xf32>
    %65 = vector.shape_cast %64 : vector<16xf32> to vector<16x1xf32>
    %66 = vector.broadcast %65 : vector<16x1xf32> to vector<16x16xf32>
    %67 = arith.divf %63, %66 : vector<16x16xf32>
    %68 = arith.truncf %67 : vector<16x16xf32> to vector<16x16xbf16>
    %69 = arith.truncf %57 : vector<16x128xf32> to vector<16x128xbf16>
    %cst_25 = arith.constant dense<0.000000e+00> : vector<16x128xf32>
    %70 = tpu.matmul %68, %69, %cst_25 {dimension_numbers = #tpu.dot_dimension_numbers<[1], [0], [0], [1], [0, 0, 1, 1], [], []>} : vector<16x16xbf16>, vector<16x128xbf16>, vector<16x128xf32> -> vector<16x128xf32>
    %c0_26 = arith.constant 0 : index
    %c128 = arith.constant 128 : index
    %71 = vector.load %arg15[%c0_26, %c128] : memref<32x256xf32, #tpu.memory_space<vmem>>, vector<16x128xf32>
    tpu.vector_store %arg15[%c0_26, %c128], %70 {strides = array<i32>} : memref<32x256xf32, #tpu.memory_space<vmem>>, vector<16x128xf32>,
    %72 = vector.extract_strided_slice %33 {offsets = [16, 0], sizes = [16, 128], strides = [1, 1]} : vector<32x768xf32> to vector<16x128xf32>
    %73 = arith.truncf %72 : vector<16x128xf32> to vector<16x128xbf16>
    %74 = vector.extract_strided_slice %33 {offsets = [16, 256], sizes = [16, 128], strides = [1, 1]} : vector<32x768xf32> to vector<16x128xf32>
    %75 = arith.truncf %74 : vector<16x128xf32> to vector<16x128xbf16>
    %76 = vector.extract_strided_slice %33 {offsets = [16, 512], sizes = [16, 128], strides = [1, 1]} : vector<32x768xf32> to vector<16x128xf32>
    %cst_27 = arith.constant dense<0.000000e+00> : vector<16x16xf32>
    %77 = tpu.matmul %73, %75, %cst_27 {dimension_numbers = #tpu.dot_dimension_numbers<[1], [1], [0], [0], [0, 0, 1, 0], [], []>} : vector<16x128xbf16>, vector<16x128xbf16>, vector<16x16xf32> -> vector<16x16xf32>
    %cst_28 = arith.constant dense<0xFF800000> : vector<16xf32>
    %78 = vector.multi_reduction <maximumf>, %77, %cst_28 [1] : vector<16x16xf32> to vector<16xf32>
    %79 = vector.shape_cast %78 : vector<16xf32> to vector<16x1xf32>
    %80 = vector.broadcast %79 : vector<16x1xf32> to vector<16x16xf32>
    %81 = arith.subf %77, %80 : vector<16x16xf32>
    %82 = math.exp %81 : vector<16x16xf32>
    %cst_29 = arith.constant dense<0.000000e+00> : vector<16xf32>
    %83 = vector.multi_reduction <add>, %82, %cst_29 [1] : vector<16x16xf32> to vector<16xf32>
    %84 = vector.shape_cast %83 : vector<16xf32> to vector<16x1xf32>
    %85 = vector.broadcast %84 : vector<16x1xf32> to vector<16x16xf32>
    %86 = arith.divf %82, %85 : vector<16x16xf32>
    %87 = arith.truncf %86 : vector<16x16xf32> to vector<16x16xbf16>
    %88 = arith.truncf %76 : vector<16x128xf32> to vector<16x128xbf16>
    %cst_30 = arith.constant dense<0.000000e+00> : vector<16x128xf32>
    %89 = tpu.matmul %87, %88, %cst_30 {dimension_numbers = #tpu.dot_dimension_numbers<[1], [0], [0], [1], [0, 0, 1, 1], [], []>} : vector<16x16xbf16>, vector<16x128xbf16>, vector<16x128xf32> -> vector<16x128xf32>
    %c16 = arith.constant 16 : index
    %c0_31 = arith.constant 0 : index
    %90 = vector.load %arg15[%c16, %c0_31] : memref<32x256xf32, #tpu.memory_space<vmem>>, vector<16x128xf32>
    tpu.vector_store %arg15[%c16, %c0_31], %89 {strides = array<i32>} : memref<32x256xf32, #tpu.memory_space<vmem>>, vector<16x128xf32>,
    %91 = vector.extract_strided_slice %33 {offsets = [16, 128], sizes = [16, 128], strides = [1, 1]} : vector<32x768xf32> to vector<16x128xf32>
    %92 = arith.truncf %91 : vector<16x128xf32> to vector<16x128xbf16>
    %93 = vector.extract_strided_slice %33 {offsets = [16, 384], sizes = [16, 128], strides = [1, 1]} : vector<32x768xf32> to vector<16x128xf32>
    %94 = arith.truncf %93 : vector<16x128xf32> to vector<16x128xbf16>
    %95 = vector.extract_strided_slice %33 {offsets = [16, 640], sizes = [16, 128], strides = [1, 1]} : vector<32x768xf32> to vector<16x128xf32>
    %cst_32 = arith.constant dense<0.000000e+00> : vector<16x16xf32>
    %96 = tpu.matmul %92, %94, %cst_32 {dimension_numbers = #tpu.dot_dimension_numbers<[1], [1], [0], [0], [0, 0, 1, 0], [], []>} : vector<16x128xbf16>, vector<16x128xbf16>, vector<16x16xf32> -> vector<16x16xf32>
    %cst_33 = arith.constant dense<0xFF800000> : vector<16xf32>
    %97 = vector.multi_reduction <maximumf>, %96, %cst_33 [1] : vector<16x16xf32> to vector<16xf32>
    %98 = vector.shape_cast %97 : vector<16xf32> to vector<16x1xf32>
    %99 = vector.broadcast %98 : vector<16x1xf32> to vector<16x16xf32>
    %100 = arith.subf %96, %99 : vector<16x16xf32>
    %101 = math.exp %100 : vector<16x16xf32>
    %cst_34 = arith.constant dense<0.000000e+00> : vector<16xf32>
    %102 = vector.multi_reduction <add>, %101, %cst_34 [1] : vector<16x16xf32> to vector<16xf32>
    %103 = vector.shape_cast %102 : vector<16xf32> to vector<16x1xf32>
    %104 = vector.broadcast %103 : vector<16x1xf32> to vector<16x16xf32>
    %105 = arith.divf %101, %104 : vector<16x16xf32>
    %106 = arith.truncf %105 : vector<16x16xf32> to vector<16x16xbf16>
    %107 = arith.truncf %95 : vector<16x128xf32> to vector<16x128xbf16>
    %cst_35 = arith.constant dense<0.000000e+00> : vector<16x128xf32>
    %108 = tpu.matmul %106, %107, %cst_35 {dimension_numbers = #tpu.dot_dimension_numbers<[1], [0], [0], [1], [0, 0, 1, 1], [], []>} : vector<16x16xbf16>, vector<16x128xbf16>, vector<16x128xf32> -> vector<16x128xf32>
    %c16_36 = arith.constant 16 : index
    %c128_37 = arith.constant 128 : index
    %109 = vector.load %arg15[%c16_36, %c128_37] : memref<32x256xf32, #tpu.memory_space<vmem>>, vector<16x128xf32>
    tpu.vector_store %arg15[%c16_36, %c128_37], %108 {strides = array<i32>} : memref<32x256xf32, #tpu.memory_space<vmem>>, vector<16x128xf32>,
    %c0_38 = arith.constant 0 : index
    %c0_39 = arith.constant 0 : index
    %110 = vector.load %arg15[%c0_38, %c0_39] : memref<32x256xf32, #tpu.memory_space<vmem>>, vector<32x256xf32>
    %111 = arith.truncf %110 : vector<32x256xf32> to vector<32x256xbf16>
    %c0_40 = arith.constant 0 : index
    %c0_41 = arith.constant 0 : index
    %c0_42 = arith.constant 0 : index
    %112 = vector.load %arg6[%c0_40, %c0_41, %c0_42] : memref<1x256x128xbf16, #tpu.memory_space<vmem>>, vector<1x256x128xbf16>
    %113 = vector.shape_cast %112 : vector<1x256x128xbf16> to vector<256x128xbf16>
    %cst_43 = arith.constant dense<0.000000e+00> : vector<32x128xf32>
    %114 = tpu.matmul %111, %113, %cst_43 {dimension_numbers = #tpu.dot_dimension_numbers<[1], [0], [0], [1], [0, 0, 1, 1], [], []>} : vector<32x256xbf16>, vector<256x128xbf16>, vector<32x128xf32> -> vector<32x128xf32>
    %115 = arith.addf %3, %114 : vector<32x128xf32>
    %c0_44 = arith.constant 0 : index
    %c0_45 = arith.constant 0 : index
    %c0_46 = arith.constant 0 : index
    %116 = vector.load %arg7[%c0_44, %c0_45, %c0_46] : memref<1x1x128xf32, #tpu.memory_space<vmem>>, vector<1x1x128xf32>
    %117 = vector.shape_cast %116 : vector<1x1x128xf32> to vector<1x128xf32>
    %c0_47 = arith.constant 0 : index
    %c0_48 = arith.constant 0 : index
    %c0_49 = arith.constant 0 : index
    %118 = vector.load %arg8[%c0_47, %c0_48, %c0_49] : memref<1x1x128xf32, #tpu.memory_space<vmem>>, vector<1x1x128xf32>
    %119 = vector.shape_cast %118 : vector<1x1x128xf32> to vector<1x128xf32>
    %cst_50 = arith.constant dense<0.000000e+00> : vector<32xf32>
    %120 = vector.multi_reduction <add>, %115, %cst_50 [1] : vector<32x128xf32> to vector<32xf32>
    %121 = vector.shape_cast %120 : vector<32xf32> to vector<32x1xf32>
    %cst_51 = arith.constant 1.280000e+02 : f32
    %122 = vector.broadcast %cst_51 : f32 to vector<32x1xf32>
    %123 = arith.divf %121, %122 : vector<32x1xf32>
    %124 = vector.broadcast %123 : vector<32x1xf32> to vector<32x128xf32>
    %125 = arith.subf %115, %124 : vector<32x128xf32>
    %126 = arith.mulf %125, %125 : vector<32x128xf32>
    %cst_52 = arith.constant dense<0.000000e+00> : vector<32xf32>
    %127 = vector.multi_reduction <add>, %126, %cst_52 [1] : vector<32x128xf32> to vector<32xf32>
    %128 = vector.shape_cast %127 : vector<32xf32> to vector<32x1xf32>
    %cst_53 = arith.constant 1.280000e+02 : f32
    %129 = vector.broadcast %cst_53 : f32 to vector<32x1xf32>
    %130 = arith.divf %128, %129 : vector<32x1xf32>
    %131 = vector.broadcast %123 : vector<32x1xf32> to vector<32x128xf32>
    %132 = arith.subf %115, %131 : vector<32x128xf32>
    %cst_54 = arith.constant 9.99999974E-6 : f32
    %133 = vector.broadcast %cst_54 : f32 to vector<32x1xf32>
    %134 = arith.addf %130, %133 : vector<32x1xf32>
    %135 = math.rsqrt %134 : vector<32x1xf32>
    %136 = vector.broadcast %135 : vector<32x1xf32> to vector<32x128xf32>
    %137 = arith.mulf %132, %136 : vector<32x128xf32>
    %138 = vector.broadcast %117 : vector<1x128xf32> to vector<32x128xf32>
    %139 = arith.mulf %137, %138 : vector<32x128xf32>
    %140 = vector.broadcast %119 : vector<1x128xf32> to vector<32x128xf32>
    %141 = arith.addf %139, %140 : vector<32x128xf32>
    %142 = arith.truncf %141 : vector<32x128xf32> to vector<32x128xbf16>
    %c0_55 = arith.constant 0 : index
    %c0_56 = arith.constant 0 : index
    %c0_57 = arith.constant 0 : index
    %143 = vector.load %arg9[%c0_55, %c0_56, %c0_57] : memref<1x128x682xbf16, #tpu.memory_space<vmem>>, vector<1x128x682xbf16>
    %144 = vector.shape_cast %143 : vector<1x128x682xbf16> to vector<128x682xbf16>
    %cst_58 = arith.constant dense<0.000000e+00> : vector<32x682xf32>
    %145 = tpu.matmul %142, %144, %cst_58 {dimension_numbers = #tpu.dot_dimension_numbers<[1], [0], [0], [1], [0, 0, 1, 1], [], []>} : vector<32x128xbf16>, vector<128x682xbf16>, vector<32x682xf32> -> vector<32x682xf32>
    %146 = vector.extract_strided_slice %145 {offsets = [0, 0], sizes = [32, 341], strides = [1, 1]} : vector<32x682xf32> to vector<32x341xf32>
    %147 = vector.extract_strided_slice %145 {offsets = [0, 341], sizes = [32, 341], strides = [1, 1]} : vector<32x682xf32> to vector<32x341xf32>
    %cst_59 = arith.constant 5.000000e-01 : f32
    %148 = vector.broadcast %cst_59 : f32 to vector<32x341xf32>
    %149 = arith.mulf %148, %147 : vector<32x341xf32>
    %cst_60 = arith.constant 0.707106769 : f32
    %150 = vector.broadcast %cst_60 : f32 to vector<32x341xf32>
    %151 = arith.mulf %147, %150 : vector<32x341xf32>
    %152 = math.erf %151 : vector<32x341xf32>
    %cst_61 = arith.constant 1.000000e+00 : f32
    %153 = vector.broadcast %cst_61 : f32 to vector<32x341xf32>
    %154 = arith.addf %153, %152 : vector<32x341xf32>
    %155 = arith.mulf %149, %154 : vector<32x341xf32>
    %156 = arith.mulf %146, %155 : vector<32x341xf32>
    %c0_62 = arith.constant 0 : index
    %c0_63 = arith.constant 0 : index
    %c0_64 = arith.constant 0 : index
    %157 = vector.load %arg10[%c0_62, %c0_63, %c0_64] : memref<1x1x341xf32, #tpu.memory_space<vmem>>, vector<1x1x341xf32>
    %158 = vector.shape_cast %157 : vector<1x1x341xf32> to vector<1x341xf32>
    %c0_65 = arith.constant 0 : index
    %c0_66 = arith.constant 0 : index
    %c0_67 = arith.constant 0 : index
    %159 = vector.load %arg11[%c0_65, %c0_66, %c0_67] : memref<1x1x341xf32, #tpu.memory_space<vmem>>, vector<1x1x341xf32>
    %160 = vector.shape_cast %159 : vector<1x1x341xf32> to vector<1x341xf32>
    %cst_68 = arith.constant dense<0.000000e+00> : vector<32xf32>
    %161 = vector.multi_reduction <add>, %156, %cst_68 [1] : vector<32x341xf32> to vector<32xf32>
    %162 = vector.shape_cast %161 : vector<32xf32> to vector<32x1xf32>
    %cst_69 = arith.constant 3.410000e+02 : f32
    %163 = vector.broadcast %cst_69 : f32 to vector<32x1xf32>
    %164 = arith.divf %162, %163 : vector<32x1xf32>
    %165 = vector.broadcast %164 : vector<32x1xf32> to vector<32x341xf32>
    %166 = arith.subf %156, %165 : vector<32x341xf32>
    %167 = arith.mulf %166, %166 : vector<32x341xf32>
    %cst_70 = arith.constant dense<0.000000e+00> : vector<32xf32>
    %168 = vector.multi_reduction <add>, %167, %cst_70 [1] : vector<32x341xf32> to vector<32xf32>
    %169 = vector.shape_cast %168 : vector<32xf32> to vector<32x1xf32>
    %cst_71 = arith.constant 3.410000e+02 : f32
    %170 = vector.broadcast %cst_71 : f32 to vector<32x1xf32>
    %171 = arith.divf %169, %170 : vector<32x1xf32>
    %172 = vector.broadcast %164 : vector<32x1xf32> to vector<32x341xf32>
    %173 = arith.subf %156, %172 : vector<32x341xf32>
    %cst_72 = arith.constant 9.99999974E-6 : f32
    %174 = vector.broadcast %cst_72 : f32 to vector<32x1xf32>
    %175 = arith.addf %171, %174 : vector<32x1xf32>
    %176 = math.rsqrt %175 : vector<32x1xf32>
    %177 = vector.broadcast %176 : vector<32x1xf32> to vector<32x341xf32>
    %178 = arith.mulf %173, %177 : vector<32x341xf32>
    %179 = vector.broadcast %158 : vector<1x341xf32> to vector<32x341xf32>
    %180 = arith.mulf %178, %179 : vector<32x341xf32>
    %181 = vector.broadcast %160 : vector<1x341xf32> to vector<32x341xf32>
    %182 = arith.addf %180, %181 : vector<32x341xf32>
    %183 = arith.truncf %182 : vector<32x341xf32> to vector<32x341xbf16>
    %c0_73 = arith.constant 0 : index
    %c0_74 = arith.constant 0 : index
    %c0_75 = arith.constant 0 : index
    %184 = vector.load %arg12[%c0_73, %c0_74, %c0_75] : memref<1x341x128xbf16, #tpu.memory_space<vmem>>, vector<1x341x128xbf16>
    %185 = vector.shape_cast %184 : vector<1x341x128xbf16> to vector<341x128xbf16>
    %cst_76 = arith.constant dense<0.000000e+00> : vector<32x128xf32>
    %186 = tpu.matmul %183, %185, %cst_76 {dimension_numbers = #tpu.dot_dimension_numbers<[1], [0], [0], [1], [0, 0, 1, 1], [], []>} : vector<32x341xbf16>, vector<341x128xbf16>, vector<32x128xf32> -> vector<32x128xf32>
    %187 = arith.addf %115, %186 : vector<32x128xf32>
    %c0_77 = arith.constant 0 : index
    %c0_78 = arith.constant 0 : index
    %188 = vector.load %arg14[%c0_77, %c0_78] : memref<32x128xf32, #tpu.memory_space<vmem>>, vector<32x128xf32>
    tpu.vector_store %arg14[%c0_77, %c0_78], %187 {strides = array<i32>} : memref<32x128xf32, #tpu.memory_space<vmem>>, vector<32x128xf32>,
    %c1_i32 = arith.constant 1 : i32
    %189 = arith.cmpi eq, %arg1, %c1_i32 : i32
    %190 = arith.extui %189 : i1 to i32
    %c0_i32_79 = arith.constant 0 : i32
    %191 = arith.cmpi ne, %190, %c0_i32_79 : i32
    scf.if %191 {
      %c0_80 = arith.constant 0 : index
      %c0_81 = arith.constant 0 : index
      %192 = vector.load %arg13[%c0_80, %c0_81] : memref<32x128xf32, #tpu.memory_space<vmem>>, vector<32x128xf32>
      tpu.vector_store %arg13[%c0_80, %c0_81], %187 {strides = array<i32>} : memref<32x128xf32, #tpu.memory_space<vmem>>, vector<32x128xf32>,
    } else {
    }
    return
  }
  func.func @transform_0(%arg0: i32, %arg1: i32) -> (i32, i32) {
    %c0_i32 = arith.constant 0 : i32
    %c0_i32_0 = arith.constant 0 : i32
    return %arg0, %c0_i32 : i32, i32
  }
  func.func @transform_1(%arg0: i32, %arg1: i32) -> (i32, i32, i32) {
    %c0_i32 = arith.constant 0 : i32
    %c0_i32_0 = arith.constant 0 : i32
    %c0_i32_1 = arith.constant 0 : i32
    return %arg1, %c0_i32, %c0_i32_0 : i32, i32, i32
  }
  func.func @transform_2(%arg0: i32, %arg1: i32) -> (i32, i32, i32) {
    %c0_i32 = arith.constant 0 : i32
    %c0_i32_0 = arith.constant 0 : i32
    %c0_i32_1 = arith.constant 0 : i32
    return %arg1, %c0_i32, %c0_i32_0 : i32, i32, i32
  }
  func.func @transform_3(%arg0: i32, %arg1: i32) -> (i32, i32, i32) {
    %c0_i32 = arith.constant 0 : i32
    %c0_i32_0 = arith.constant 0 : i32
    %c0_i32_1 = arith.constant 0 : i32
    return %arg1, %c0_i32, %c0_i32_0 : i32, i32, i32
  }
  func.func @transform_4(%arg0: i32, %arg1: i32) -> (i32, i32, i32) {
    %c0_i32 = arith.constant 0 : i32
    %c0_i32_0 = arith.constant 0 : i32
    %c0_i32_1 = arith.constant 0 : i32
    return %arg1, %c0_i32, %c0_i32_0 : i32, i32, i32
  }
  func.func @transform_5(%arg0: i32, %arg1: i32) -> (i32, i32, i32) {
    %c0_i32 = arith.constant 0 : i32
    %c0_i32_0 = arith.constant 0 : i32
    %c0_i32_1 = arith.constant 0 : i32
    return %arg1, %c0_i32, %c0_i32_0 : i32, i32, i32
  }
  func.func @transform_6(%arg0: i32, %arg1: i32) -> (i32, i32, i32) {
    %c0_i32 = arith.constant 0 : i32
    %c0_i32_0 = arith.constant 0 : i32
    %c0_i32_1 = arith.constant 0 : i32
    return %arg1, %c0_i32, %c0_i32_0 : i32, i32, i32
  }
  func.func @transform_7(%arg0: i32, %arg1: i32) -> (i32, i32, i32) {
    %c0_i32 = arith.constant 0 : i32
    %c0_i32_0 = arith.constant 0 : i32
    %c0_i32_1 = arith.constant 0 : i32
    return %arg1, %c0_i32, %c0_i32_0 : i32, i32, i32
  }
  func.func @transform_8(%arg0: i32, %arg1: i32) -> (i32, i32, i32) {
    %c0_i32 = arith.constant 0 : i32
    %c0_i32_0 = arith.constant 0 : i32
    %c0_i32_1 = arith.constant 0 : i32
    return %arg1, %c0_i32, %c0_i32_0 : i32, i32, i32
  }
  func.func @transform_9(%arg0: i32, %arg1: i32) -> (i32, i32, i32) {
    %c0_i32 = arith.constant 0 : i32
    %c0_i32_0 = arith.constant 0 : i32
    %c0_i32_1 = arith.constant 0 : i32
    return %arg1, %c0_i32, %c0_i32_0 : i32, i32, i32
  }
  func.func @transform_10(%arg0: i32, %arg1: i32) -> (i32, i32, i32) {
    %c0_i32 = arith.constant 0 : i32
    %c0_i32_0 = arith.constant 0 : i32
    %c0_i32_1 = arith.constant 0 : i32
    return %arg1, %c0_i32, %c0_i32_0 : i32, i32, i32
  }
  func.func @transform_11(%arg0: i32, %arg1: i32) -> (i32, i32) {
    %c0_i32 = arith.constant 0 : i32
    %c0_i32_0 = arith.constant 0 : i32
    return %arg0, %c0_i32 : i32, i32
  }
}

</mosaic_0001>

<bundles_post_ra>
// kernel: tpu_custom_call.1
= control target key start
LH: loop header
LB: loop body
LE: loop exit
PB: predicated region body
PF: predicated region fallthrough
CT: control target
= control target key end

     0   :  { %s4404_s0 = inlined_call_operand.vmem [shape: f32[32,128], index: 0, kind: input, shape index: {}]   ;;  %s4405_s1 = inlined_call_operand.vmem [shape: f32[2,1,128], index: 1, kind: input, shape index: {}]   ;;  %s4406_s2 = inlined_call_operand.vmem [shape: f32[2,1,128], index: 2, kind: input, shape index: {}]   ;;  %s4407_s3 = inlined_call_operand.vmem [shape: bf16[2,128,768], index: 3, kind: input, shape index: {}]   ;;  %s4408_s4 = inlined_call_operand.vmem [shape: bf16[2,256,128], index: 4, kind: input, shape index: {}]   ;;  %s4409_s5 = inlined_call_operand.vmem [shape: f32[2,1,128], index: 5, kind: input, shape index: {}]   ;;  %s4410_s6 = inlined_call_operand.vmem [shape: f32[2,1,128], index: 6, kind: input, shape index: {}]   ;;  %s4411_s7 = inlined_call_operand.vmem [shape: bf16[2,128,682], index: 7, kind: input, shape index: {}]   ;;  %s4412_s8 = inlined_call_operand.vmem [shape: f32[2,1,341], index: 8, kind: input, shape index: {}]   ;;  %s4413_s9 = inlined_call_operand.vmem [shape: f32[2,1,341], index: 9, kind: input, shape index: {}]   ;;  %s4414_s10 = inlined_call_operand.vmem [shape: bf16[2,341,128], index: 10, kind: input, shape index: {}]   ;;  %s4415_s11 = inlined_call_operand.hbm [shape: f32[32,128], index: 11, kind: output, shape index: {}]  }
   0x1   :  { %4418 = sst [smem:[#allocation9_spill]] %s4408_s4 }
   0x2   :  { %4419 = sst [smem:[#allocation10_spill]] %s4415_s11 }
   0x3   :  { %16 = vsyncpa [#allocation5], 0  ;;  %s3793_s17 = smov 0   ;;  %s3795_s18 = smov 0  }
   0x4   :  { %s3797_s19 = smov 0  }
   0x5 LB: > { %4420 = sst [smem:[#allocation7_spill]] %s3719_s18  ;;  %s31_s21 = sadd.s32 1, %s3719_s18  ;;  %s3723_s19 = sphi %s3797_s19, %s22_s19   ;;  %s3719_s18 = sphi %s3795_s18, %s4430_s18   ;;  %s3715_s17 = sphi %s3793_s17, %s4429_s17  }
   0x6   : > { %p32_p0 = scmp.ge.s32.totalorder %s31_s21, 2  ;;  %p3056_p1 = scmp.ge.s32.totalorder %s3723_s19, 1 }
   0x7   : > { %p441_p2 = scmp.lt.s32.totalorder %s3723_s19, 3 }
   0x8   : > { %s4432_s21 = smov (%p32_p0, %s31_s21), 0 }
   0x9   : > { %4421 = sst [smem:[#allocation8_spill]] %s4432_s21  ;;  %p442_p3 = pnand %p3056_p1, %p441_p2 }
   0xa   : > { %p522_p4 = scmp.lt.s32.totalorder (!%p442_p3), %s3715_s17, 1  ;;  %s4422_s4 = sld [smem:[#allocation9_spill]] (!%p442_p3) }
   0xb   : > { %445 = sbr.rel (%p442_p3) target bundleno = 3884 (0xf2c), region = 64  ;;  %p3062_p5 = scmp.ne.s32.totalorder (!%p442_p3), %s3715_s17, 0 }
  0x12   : > { %s3816_s22 = scalar_select %p522_p4, %s3715_s17, 1 }
  0x13   : > { %v568_v0 = vld [vmem:[%s4404_s0] sm:$0xff] (!%p3062_p5)  ;;  %v569_v1 = vld [vmem:[%s4404_s0 + $0x8] sm:$0xff] (!%p3062_p5)  ;;  %v570_v2 = vld [vmem:[%s4404_s0 + $0x10] sm:$0xff] (!%p3062_p5) }
  0x14   : > { %s3357_s29 = smul.u32 384, %s3816_s22  ;;  %s3212_s30 = sshll.u32 %s3816_s22, 7  ;;  %572 = vst [vmem:[#allocation2] sm:$0xff] (!%p3062_p5), %v568_v0  ;;  %573 = vst [vmem:[#allocation2 + $0x8] sm:$0xff] (!%p3062_p5), %v569_v1  ;;  %v571_v3 = vld [vmem:[%s4404_s0 + $0x18] sm:$0xff] (!%p3062_p5) }
  0x15   : > { %s3831_s14 = scalar_lea.vmem %s4422_s4, %s3212_s30  ;;  %s543_s26 = scalar_lea.vmem %s4410_s6, %s3816_s22  ;;  %574 = vst [vmem:[#allocation2 + $0x10] sm:$0xff] (!%p3062_p5), %v570_v2  ;;  %575 = vst [vmem:[#allocation2 + $0x18] sm:$0xff] (!%p3062_p5), %v571_v3 }
  0x16   : > { %s3840_s21 = scalar_lea.vmem %s4407_s3, %s3357_s29  ;;  %s3849_s11 = scalar_lea.vmem %s4411_s7, %s3357_s29 }
  0x17   : > { %s3358_s30 = smul.u32 3, %s3816_s22 }
  0x18   : > { %s3359_s12 = smul.u32 172, %s3816_s22 }
  0x19   : > { %s3856_s15 = scalar_lea.vmem %s4412_s8, %s3358_s30  ;;  %s3861_s24 = scalar_lea.vmem %s4413_s9, %s3358_s30 }
  0x1a   : > { %s3866_s25 = scalar_lea.vmem %s4414_s10, %s3359_s12  ;;  %567 = sbr.rel (%p3062_p5) target bundleno = 33 (0x21), region = 68 }
  0x21 PF: > { %v576_v4 = vld [vmem:[#allocation2] sm:$0xff]  ;;  %v577_v5 = vld [vmem:[#allocation2 + $0x8] sm:$0xff]  ;;  %v578_v6 = vld [vmem:[#allocation2 + $0x10] sm:$0xff]  ;;  %v3725_v50 = vmov 0   ;;  %s4423_s18 = scalar_lea.vmem %s4405_s1, %s3816_s22  ;;  %s4424_s4 = scalar_lea.vmem %s4406_s2, %s3816_s22  ;;  %vm3727_vm0 = vmmov 0   ;;  %vm1139_vm1 = vcmask 130048  }
  0x22   : > { %582 = vadd.xlane.f32.xlu0 %v576_v4  ;;  %v3398_v7 = vld [vmem:[%s3840_s21 + $0x4] ss:$24 sps:$4 sm:$0xff]   ;;  %v3402_v9 = vld [vmem:[%s3840_s21] ss:$24 sps:$4 sm:$0xff]   ;;  %v3404_v11 = vld [vmem:[%s3840_s21 + $0x34] ss:$24 sps:$4 sm:$0xff]   ;;  %969 = vmatprep.mubr.bf16.mxu0 %v3725_v50  ;;  %s4425_s27 = scalar_lea.vmem %s4409_s5, %s3816_s22 }
  0x23   : > { %v3400_v8 = vld [vmem:[%s3840_s21 + $0xc] ss:$24 sps:$4 sm:$0xff]   ;;  %v3403_v10 = vld [vmem:[%s3840_s21 + $0x8] ss:$24 sps:$4 sm:$0xff]   ;;  %v3406_v12 = vld [vmem:[%s3840_s21 + $0x3c] ss:$24 sps:$4 sm:$0xff]   ;;  %937 = vmatprep.subr.bf16.mxu0 %v3398_v7  ;;  %1022 = vmatprep.mubr.bf16.mxu1 %v3725_v50 }
  0x24   : > { %990 = vmatprep.subr.bf16.mxu1 %v3400_v8  ;;  %938 = vmatpush1.bf16.msra.mxu0 %v3402_v9  ;;  %v3897_v24 = vld [vmem:[#allocation2 + $0x18] sm:$0xff]  ;;  %v3408_v26 = vld [vmem:[%s3840_s21 + $0x30] ss:$24 sps:$4 sm:$0xff]   ;;  %v3412_v29 = vld [vmem:[%s3840_s21 + $0x6c] ss:$24 sps:$4 sm:$0xff]   ;;  %vm2385_vm2 = vcmask 351232  }
  0x25   : > { %991 = vmatpush1.bf16.msra.mxu1 %v3403_v10  ;;  %939 = vmatprep.subr.bf16.mxu0 %v3404_v11  ;;  %v3409_v27 = vld [vmem:[%s3840_s21 + $0x38] ss:$24 sps:$4 sm:$0xff]   ;;  %v3410_v28 = vld [vmem:[%s3840_s21 + $0x64] ss:$24 sps:$4 sm:$0xff]   ;;  %v3415_v31 = vld [vmem:[%s3840_s21 + $0x68] ss:$24 sps:$4 sm:$0xff]  }
  0x26   : > { %584 = vadd.xlane.f32.xlu0 %v577_v5  ;;  %992 = vmatprep.subr.bf16.mxu1 %v3406_v12  ;;  %v3414_v30 = vld [vmem:[%s3840_s21 + $0x60] ss:$24 sps:$4 sm:$0xff]   ;;  %v3416_v32 = vld [vmem:[%s3840_s21 + $0x94] ss:$24 sps:$4 sm:$0xff]   ;;  %v3420_v34 = vld [vmem:[%s3840_s21 + $0x90] ss:$24 sps:$4 sm:$0xff]  }
  0x27   : > { %v3418_v33 = vld [vmem:[%s3840_s21 + $0x9c] ss:$24 sps:$4 sm:$0xff]   ;;  %v3421_v35 = vld [vmem:[%s3840_s21 + $0x98] ss:$24 sps:$4 sm:$0xff]   ;;  %v3424_v37 = vld [vmem:[%s3840_s21 + $0xcc] ss:$24 sps:$4 sm:$0xff]  }
  0x28   : > { %940 = vmatpush1.bf16.msra.mxu0 %v3408_v26  ;;  %v3422_v36 = vld [vmem:[%s3840_s21 + $0xc4] ss:$24 sps:$4 sm:$0xff]   ;;  %v3426_v38 = vld [vmem:[%s3840_s21 + $0xc0] ss:$24 sps:$4 sm:$0xff]   ;;  %v3428_v40 = vld [vmem:[%s3840_s21 + $0xf4] ss:$24 sps:$4 sm:$0xff]  }
  0x29   : > { %993 = vmatpush1.bf16.msra.mxu1 %v3409_v27  ;;  %941 = vmatprep.subr.bf16.mxu0 %v3410_v28  ;;  %v3427_v39 = vld [vmem:[%s3840_s21 + $0xc8] ss:$24 sps:$4 sm:$0xff]   ;;  %v3430_v41 = vld [vmem:[%s3840_s21 + $0xfc] ss:$24 sps:$4 sm:$0xff]   ;;  %v3433_v43 = vld [vmem:[%s3840_s21 + $0xf8] ss:$24 sps:$4 sm:$0xff]  }
  0x2a   : > { %586 = vadd.xlane.f32.xlu0 %v578_v6  ;;  %994 = vmatprep.subr.bf16.mxu1 %v3412_v29  ;;  %v3432_v42 = vld [vmem:[%s3840_s21 + $0xf0] ss:$24 sps:$4 sm:$0xff]   ;;  %v3434_v44 = vld [vmem:[%s3840_s21 + $0x124] ss:$24 sps:$4 sm:$0xff]   ;;  %v3438_v46 = vld [vmem:[%s3840_s21 + $0x120] ss:$24 sps:$4 sm:$0xff]  }
  0x2b   : > { %v3436_v45 = vld [vmem:[%s3840_s21 + $0x12c] ss:$24 sps:$4 sm:$0xff]   ;;  %v3439_v47 = vld [vmem:[%s3840_s21 + $0x128] ss:$24 sps:$4 sm:$0xff]   ;;  %v3442_v49 = vld [vmem:[%s3840_s21 + $0x15c] ss:$24 sps:$4 sm:$0xff]  }
  0x2c   : > { %942 = vmatpush1.bf16.msra.mxu0 %v3414_v30  ;;  %v3440_v48 = vld [vmem:[%s3840_s21 + $0x154] ss:$24 sps:$4 sm:$0xff]   ;;  %v3444_v51 = vld [vmem:[%s3840_s21 + $0x150] ss:$24 sps:$4 sm:$0xff]   ;;  %v3063_v2 = vld [vmem:[%s4423_s18] ss:$0 sm:$0xff] }
  0x2d   : > { %995 = vmatpush1.bf16.msra.mxu1 %v3415_v31  ;;  %943 = vmatprep.subr.bf16.mxu0 %v3416_v32  ;;  %v3445_v52 = vld [vmem:[%s3840_s21 + $0x158] ss:$24 sps:$4 sm:$0xff]   ;;  %v3448_v53 = vld [vmem:[%s3840_s21 + $0x14] ss:$24 sps:$4 sm:$0xff]   ;;  %v3451_v12 = vld [vmem:[%s3840_s21 + $0x44] ss:$24 sps:$4 sm:$0xff]  }
  0x2e   : > { %996 = vmatprep.subr.bf16.mxu1 %v3418_v33  ;;  %v3446_v10 = vld [vmem:[%s3840_s21 + $0x10] ss:$24 sps:$4 sm:$0xff]   ;;  %v3469_v26 = vld [vmem:[%s3840_s21 + $0x164] ss:$24 sps:$4 sm:$0xff]   ;;  %v3467_v27 = vld [vmem:[%s3840_s21 + $0x160] ss:$24 sps:$4 sm:$0xff]  }
  0x2f   : > { %v3726_v28 = vmov 0.0   ;;  %vm2425_vm3 = vcmask 695296   ;;  %vm2758_vm4 = vcmask 1041408   ;;  %vm2759_vm5 = vcmask 1042432   ;;  %p3207_p6 = scmp.ne.s32.totalorder %s3715_s17, 1 }
  0x30   : > { %944 = vmatpush1.bf16.msra.mxu0 %v3420_v34 }
  0x31   : > { %997 = vmatpush1.bf16.msra.mxu1 %v3421_v35  ;;  %945 = vmatprep.subr.bf16.mxu0 %v3422_v36 }
  0x32   : > { %998 = vmatprep.subr.bf16.mxu1 %v3424_v37 }
  0x34   : > { %946 = vmatpush1.bf16.msra.mxu0 %v3426_v38 }
  0x35   : > { %999 = vmatpush1.bf16.msra.mxu1 %v3427_v39  ;;  %947 = vmatprep.subr.bf16.mxu0 %v3428_v40 }
  0x36   : > { %1000 = vmatprep.subr.bf16.mxu1 %v3430_v41 }
  0x38   : > { %948 = vmatpush1.bf16.msra.mxu0 %v3432_v42 }
  0x39   : > { %1001 = vmatpush1.bf16.msra.mxu1 %v3433_v43  ;;  %949 = vmatprep.subr.bf16.mxu0 %v3434_v44 }
  0x3a   : > { %1002 = vmatprep.subr.bf16.mxu1 %v3436_v45 }
  0x3c   : > { %950 = vmatpush1.bf16.msra.mxu0 %v3438_v46 }
  0x3d   : > { %1003 = vmatpush1.bf16.msra.mxu1 %v3439_v47  ;;  %951 = vmatprep.subr.bf16.mxu0 %v3440_v48 }
  0x3e   : > { %1004 = vmatprep.subr.bf16.mxu1 %v3442_v49 }
  0x40   : > { %952 = vmatpush1.bf16.msra.mxu0 %v3444_v51 }
  0x41   : > { %1005 = vmatpush1.bf16.msra.mxu1 %v3445_v52  ;;  %1043 = vmatprep.subr.bf16.mxu0 %v3448_v53 }
  0x42   : > { %3293 = vmatprep.subr.bf16.mxu1 %v3726_v28 }
  0xaf   : > { %v583_v13 = vpop.xlane.xlu0 %582 }
  0xb0   : > { %v591_v14 = vmul.f32 0.0078125, %v583_v13  ;;  %v3449_v13 = vld [vmem:[%s3840_s21 + $0x40] ss:$24 sps:$4 sm:$0xff]  }
  0xb2   : > { %v3887_v15 = vsub.f32 %v576_v4, %v591_v14  ;;  %v3452_v14 = vld [vmem:[%s3840_s21 + $0x70] ss:$24 sps:$4 sm:$0xff]  }
  0xb3   : > { %v585_v16 = vpop.xlane.xlu0 %584 }
  0xb4   : > { %v592_v17 = vmul.f32 0.0078125, %v585_v16  ;;  %v599_v18 = vmul.f32 %v3887_v15, %v3887_v15  ;;  %v3457_v16 = vld [vmem:[%s3840_s21 + $0xa4] ss:$24 sps:$4 sm:$0xff]  }
  0xb6   : > { %v3891_v19 = vsub.f32 %v577_v5, %v592_v17  ;;  %603 = vadd.xlane.f32.xlu1 %v599_v18  ;;  %v3455_v17 = vld [vmem:[%s3840_s21 + $0xa0] ss:$24 sps:$4 sm:$0xff]   ;;  %v3460_v18 = vld [vmem:[%s3840_s21 + $0xd4] ss:$24 sps:$4 sm:$0xff]  }
  0xb7   : > { %v587_v20 = vpop.xlane.xlu0 %586 }
  0xb8   : > { %v600_v21 = vmul.f32 %v3891_v19, %v3891_v19  ;;  %v593_v22 = vmul.f32 0.0078125, %v587_v20  ;;  %v3463_v20 = vld [vmem:[%s3840_s21 + $0x104] ss:$24 sps:$4 sm:$0xff]  }
  0xba   : > { %605 = vadd.xlane.f32.xlu1 %v600_v21  ;;  %v3895_v23 = vsub.f32 %v578_v6, %v593_v22  ;;  %v3064_v6 = vld [vmem:[%s4424_s4] ss:$0 sm:$0xff]  ;;  %v3466_v22 = vld [vmem:[%s3840_s21 + $0x134] ss:$24 sps:$4 sm:$0xff]  }
  0xbb   : > { %v3461_v21 = vld [vmem:[%s3840_s21 + $0x100] ss:$24 sps:$4 sm:$0xff]  }
  0xbc   : > { %v601_v25 = vmul.f32 %v3895_v23, %v3895_v23 }
  0xbe   : > { %588 = vadd.xlane.f32.xlu1 %v3897_v24  ;;  %607 = vadd.xlane.f32.xlu0 %v601_v25  ;;  %v3464_v25 = vld [vmem:[%s3840_s21 + $0x130] ss:$24 sps:$4 sm:$0xff]  }
 0x143   : > { %v604_v54 = vpop.xlane.xlu1 %603 }
 0x144   : > { %v611_v55 = vmul.f32 0.0078125, %v604_v54 }
 0x146   : > { %v615_v56 = vadd.f32 1e-05, %v611_v55 }
 0x147   : > { %v606_v57 = vpop.xlane.xlu1 %605 }
 0x148   : > { %3580 = vrsqrt.f32 %v615_v56  ;;  %v612_v58 = vmul.f32 0.0078125, %v606_v57 }
 0x14a   : > { %v616_v59 = vadd.f32 1e-05, %v612_v58 }
 0x14b   : > { %v589_v60 = vpop.xlane.xlu1 %588  ;;  %v608_v29 = vpop.xlane.xlu0 %607 }
 0x14c   : > { %3582 = vrsqrt.f32 %v616_v59  ;;  %v594_v61 = vmul.f32 0.0078125, %v589_v60  ;;  %v613_v30 = vmul.f32 0.0078125, %v608_v29 }
 0x14e   : > { %v598_v62 = vsub.f32 %v3897_v24, %v594_v61  ;;  %v617_v31 = vadd.f32 1e-05, %v613_v30 }
 0x150   : > { %v602_v63 = vmul.f32 %v598_v62, %v598_v62  ;;  %3584 = vrsqrt.f32 %v617_v31 }
 0x152   : > { %v3581_v0 = vpop.eup %3580  ;;  %609 = vadd.xlane.f32.xlu1 %v602_v63 }
 0x153   : > { %v623_v1 = vmul.f32 %v3581_v0, %v3887_v15  ;;  %v3454_v15 = vld [vmem:[%s3840_s21 + $0x74] ss:$24 sps:$4 sm:$0xff]  }
 0x155   : > { %v633_v5 = vmul.f32 %v3063_v2, %v623_v1 }
 0x156   : > { %v3583_v3 = vpop.eup %3582 }
 0x157   : > { %v624_v4 = vmul.f32 %v3583_v3, %v3891_v19  ;;  %v643_v8 = vadd.f32 %v3064_v6, %v633_v5  ;;  %v3458_v19 = vld [vmem:[%s3840_s21 + $0xd0] ss:$24 sps:$4 sm:$0xff]  }
 0x159   : > { %v634_v7 = vmul.f32 %v3063_v2, %v624_v4 }
 0x15a   : > { %v3585_v35 = vpop.eup %3584 }
 0x15b   : > { %v644_v9 = vadd.f32 %v3064_v6, %v634_v7  ;;  %v625_v36 = vmul.f32 %v3585_v35, %v3895_v23 }
 0x15d   : > { %v647_v11 = vpack.c.bf16 %v644_v9, %v643_v8  ;;  %v635_v39 = vmul.f32 %v3063_v2, %v625_v36 }
 0x15f   : > { %970 = vmatmul.mubr.bf16.vlgmr.msra.gmra.mrb[0].mxu0 %v647_v11  ;;  %1023 = vmatmul.mubr.bf16.vlgmr.msra.gmra.mrb[0].mxu1 %v647_v11  ;;  %v645_v41 = vadd.f32 %v3064_v6, %v635_v39 }
 0x160   : > { %1044 = vmatpush1.bf16.msra.mxu0 %v3446_v10  ;;  %979 = vmatprep.mubr.bf16.mxu0 %v3725_v50 }
 0x161   : > { %1032 = vmatprep.mubr.bf16.mxu1 %v3725_v50  ;;  %1045 = vmatprep.subr.bf16.mxu0 %v3451_v12 }
 0x164   : > { %1046 = vmatpush1.bf16.msra.mxu0 %v3449_v13 }
 0x165   : > { %1047 = vmatprep.subr.bf16.mxu0 %v3454_v15 }
 0x168   : > { %1048 = vmatpush1.bf16.msra.mxu0 %v3452_v14 }
 0x169   : > { %1049 = vmatprep.subr.bf16.mxu0 %v3457_v16 }
 0x16c   : > { %1050 = vmatpush1.bf16.msra.mxu0 %v3455_v17 }
 0x16d   : > { %1051 = vmatprep.subr.bf16.mxu0 %v3460_v18 }
 0x170   : > { %1052 = vmatpush1.bf16.msra.mxu0 %v3458_v19 }
 0x171   : > { %1053 = vmatprep.subr.bf16.mxu0 %v3463_v20 }
 0x174   : > { %1054 = vmatpush1.bf16.msra.mxu0 %v3461_v21 }
 0x175   : > { %1055 = vmatprep.subr.bf16.mxu0 %v3466_v22 }
 0x178   : > { %1056 = vmatpush1.bf16.msra.mxu0 %v3464_v25 }
 0x179   : > { %1057 = vmatprep.subr.bf16.mxu0 %v3469_v26 }
 0x17c   : > { %1058 = vmatpush1.bf16.msra.mxu0 %v3467_v27 }
 0x17d   : > { %3329 = vmatprep.subr.bf16.mxu0 %v3726_v28 }
 0x1df   : > { %v610_v32 = vpop.xlane.xlu1 %609 }
 0x1e0   : > { %v614_v33 = vmul.f32 0.0078125, %v610_v32 }
 0x1e2   : > { %v618_v34 = vadd.f32 1e-05, %v614_v33 }
 0x1e4   : > { %3586 = vrsqrt.f32 %v618_v34 }
 0x1ee   : > { %v3587_v37 = vpop.eup %3586 }
 0x1ef   : > { %v626_v38 = vmul.f32 %v3587_v37, %v598_v62 }
 0x1f1   : > { %v636_v40 = vmul.f32 %v3063_v2, %v626_v38 }
 0x1f3   : > { %v646_v42 = vadd.f32 %v3064_v6, %v636_v40 }
 0x1f5   : > { %v648_v43 = vpack.c.bf16 %v646_v42, %v645_v41 }
 0x1f7   : > { %980 = vmatmul.mubr.bf16.gmra.mrb[4].mxu0 %v648_v43  ;;  %1033 = vmatmul.mubr.bf16.gmra.mrb[4].mxu1 %v648_v43 }
 0x1f8   : > { %1075 = vmatprep.mubr.bf16.mxu0 %v3725_v50  ;;  %3295 = vmatprep.mubr.msk.bf16.mxu1 %vm3727_vm0, %v3726_v28 }
 0x1ff   : > { %1076 = vmatmul.mubr.bf16.vlgmr.msra.gmra.mrb[8].mxu0 %v647_v11 }
 0x200   : > { %1085 = vmatprep.mubr.bf16.mxu0 %v3725_v50 }
 0x207   : > { %1086 = vmatmul.mubr.bf16.gmra.mrb[12].mxu0 %v648_v43 }
 0x208   : > { %3331 = vmatprep.mubr.msk.bf16.mxu0 %vm3727_vm0, %v3726_v28 }
 0x232   : > { %v971_v23 = vpop.f32.mrb[0].mxu0  ;;  %v1024_v44 = vpop.f32.mrb[0].mxu1 }
 0x233   : > { %v3970_v45 = vpop.f32.mrb[1].mxu0  ;;  %v3972_v46 = vpop.f32.mrb[1].mxu1 }
 0x234   : > { %v975_v47 = vpop.f32.mrb[2].mxu0  ;;  %v1028_v48 = vpop.f32.mrb[2].mxu1 }
 0x235   : > { %v1096_v49 = vpack.c.bf16 %v975_v47, %v971_v23  ;;  %v1097_v51 = vpack.c.bf16 %v1028_v48, %v1024_v44  ;;  %v3974_v52 = vpop.f32.mrb[3].mxu0  ;;  %v3976_v53 = vpop.f32.mrb[3].mxu1 }
 0x236   : > { %v1210_v54 = vpack.c.bf16 %v3974_v52, %v3970_v45  ;;  %v1211_v55 = vpack.c.bf16 %v3976_v53, %v3972_v46 }
 0x237   : > { %3294 = vmatpush3.bf16.xpose.msra.mxu1 %v1097_v51 }
 0x238   : > { %3299 = vmatprep.subr.bf16.mxu1 %v3726_v28 }
 0x23e   : > { %3296 = vmatmul.mubr.bf16.vlgmr.msra.gmra.mrb[8].mxu1 %v1096_v49 }
 0x23f   : > { %3301 = vmatprep.mubr.msk.bf16.mxu1 %vm3727_vm0, %v3726_v28 }
 0x2ca   : > { %v3985_v56 = vpop.f32.mrb[4].mxu0  ;;  %v3987_v57 = vpop.f32.mrb[4].mxu1 }
 0x2cb   : > { %v983_v58 = vpop.f32.mrb[5].mxu0  ;;  %v1036_v59 = vpop.f32.mrb[5].mxu1 }
 0x2cc   : > { %v3989_v60 = vpop.f32.mrb[6].mxu0  ;;  %v3991_v61 = vpop.f32.mrb[6].mxu1 }
 0x2cd   : > { %v1323_v62 = vpack.c.bf16 %v3989_v60, %v3985_v56  ;;  %v1324_v63 = vpack.c.bf16 %v3991_v61, %v3987_v57  ;;  %v987_v0 = vpop.f32.mrb[7].mxu0  ;;  %v1040_v1 = vpop.f32.mrb[7].mxu1  ;;  %v3484_v57 = vld [vmem:[%s3831_s14 + $0x78] sm:$0xff]  }
 0x2ce   : > { %v1436_v2 = vpack.c.bf16 %v987_v0, %v983_v58  ;;  %v1437_v3 = vpack.c.bf16 %v1040_v1, %v1036_v59  ;;  %v3485_v61 = vld [vmem:[%s3831_s14 + $0x38] sm:$0xff]  }
 0x2d0   : > { %3330 = vmatpush3.bf16.xpose.msra.mxu0 %v1437_v3 }
 0x2d2   : > { %v1077_v4 = vpop.f32.mrb[8].mxu0 }
 0x2d3   : > { %v1079_v5 = vpop.f32.mrb[9].mxu0 }
 0x2d4   : > { %v1081_v6 = vpop.f32.mrb[10].mxu0 }
 0x2d5   : > { %v1163_v7 = vpack.c.bf16 %v1081_v6, %v1077_v4  ;;  %v1083_v8 = vpop.f32.mrb[11].mxu0 }
 0x2d6   : > { %v1276_v9 = vpack.c.bf16 %v1083_v8, %v1079_v5 }
 0x2d7   : > { %3300 = vmatpush3.bf16.msra.mxu1 %v1163_v7  ;;  %3332 = vmatmul.mubr.bf16.vlgmr.msra.gmra.mrb[16].mxu0 %v1436_v2 }
 0x2d8   : > { %3305 = vmatprep.subr.bf16.mxu1 %v3726_v28 }
 0x2da   : > { %v3998_v10 = vpop.f32.mrb[12].mxu0 }
 0x2db   : > { %v4000_v11 = vpop.f32.mrb[13].mxu0 }
 0x2dc   : > { %v4002_v12 = vpop.f32.mrb[14].mxu0 }
 0x2dd   : > { %v1389_v13 = vpack.c.bf16 %v4002_v12, %v3998_v10  ;;  %v4006_v14 = vpop.f32.mrb[15].mxu0 }
 0x2de   : > { %v1502_v15 = vpack.c.bf16 %v4006_v14, %v4000_v11 }
 0x311   : > { %v1132_v16 = vpop.f32.mrb[8].mxu1 }
 0x312   : > { %v3297_v17 = vpop.f32.mrb[9].mxu1  ;;  %v1140_v18 = vsel %vm1139_vm1, %v1132_v16, -inf }
 0x313   : > { %1141 = vmax.xlane.f32.xlu0 %v1140_v18  ;;  %v1135_v19 = vpop.f32.mrb[10].mxu1  ;;  %v3472_v17 = vld [vmem:[%s3831_s14 + $0x48] sm:$0xff]  }
 0x314   : > { %v3298_v20 = vpop.f32.mrb[11].mxu1  ;;  %v1143_v21 = vsel %vm1139_vm1, %v1135_v19, -inf  ;;  %v3473_v18 = vld [vmem:[%s3831_s14 + $0x8] sm:$0xff]  }
 0x315   : > { %1144 = vmax.xlane.f32.xlu1 %v1143_v21  ;;  %v3475_v20 = vld [vmem:[%s3831_s14 + $0x10] sm:$0xff]   ;;  %v3476_v21 = vld [vmem:[%s3831_s14 + $0x58] sm:$0xff]  }
 0x3a0   : > { %v1142_v22 = vpop.xlane.xlu0 %1141 }
 0x3a1   : > { %v1146_v25 = vsub.f32 %v1132_v16, %v1142_v22  ;;  %v3471_v16 = vld [vmem:[%s3831_s14] sm:$0xff]   ;;  %v3477_v22 = vld [vmem:[%s3831_s14 + $0x18] sm:$0xff]  }
 0x3a2   : > { %v1145_v26 = vpop.xlane.xlu1 %1144 }
 0x3a3   : > { %v1148_v27 = vmul.f32 1.442695, %v1146_v25  ;;  %v1147_v29 = vsub.f32 %v1135_v19, %v1145_v26  ;;  %v3474_v19 = vld [vmem:[%s3831_s14 + $0x50] sm:$0xff]   ;;  %v3478_v25 = vld [vmem:[%s3831_s14 + $0x60] sm:$0xff]  }
 0x3a4   : > { %v3479_v26 = vld [vmem:[%s3831_s14 + $0x20] sm:$0xff]  }
 0x3a5   : > { %3588 = vpow2.f32 %v1148_v27  ;;  %v1150_v30 = vmul.f32 1.442695, %v1147_v29  ;;  %v3480_v27 = vld [vmem:[%s3831_s14 + $0x68] sm:$0xff]  }
 0x3a6   : > { %v3481_v29 = vld [vmem:[%s3831_s14 + $0x28] sm:$0xff]  }
 0x3a7   : > { %3590 = vpow2.f32 %v1150_v30  ;;  %v3482_v30 = vld [vmem:[%s3831_s14 + $0x70] sm:$0xff]  }
 0x3aa   : > { %v4012_v31 = vpop.f32.mrb[16].mxu0 }
 0x3ab   : > { %v3333_v32 = vpop.f32.mrb[17].mxu0 }
 0x3ac   : > { %v4014_v33 = vpop.f32.mrb[18].mxu0  ;;  %v3483_v32 = vld [vmem:[%s3831_s14 + $0x30] sm:$0xff]  }
 0x3ad   : > { %v3334_v34 = vpop.f32.mrb[19].mxu0 }
 0x3af   : > { %v3589_v35 = vpop.eup %3588 }
 0x3b0   : > { %v1152_v36 = vsel %vm1139_vm1, %v3589_v35, 0.0 }
 0x3b1   : > { %v3591_v37 = vpop.eup %3590  ;;  %1153 = vadd.xlane.f32.xlu0 %v1152_v36 }
 0x3b2   : > { %v1155_v38 = vsel %vm1139_vm1, %v3591_v37, 0.0 }
 0x3b3   : > { %1156 = vadd.xlane.f32.xlu1 %v1155_v38 }
 0x43e   : > { %v1154_v39 = vpop.xlane.xlu0 %1153 }
 0x43f   : > { %3592 = vrcp.f32 %v1154_v39 }
 0x440   : > { %v1157_v40 = vpop.xlane.xlu1 %1156 }
 0x441   : > { %3594 = vrcp.f32 %v1157_v40 }
 0x449   : > { %v3593_v41 = vpop.eup %3592 }
 0x44a   : > { %v1159_v43 = vmul.f32 %v3593_v41, %v3589_v35 }
 0x44b   : > { %v3595_v42 = vpop.eup %3594 }
 0x44c   : > { %v1161_v23 = vmul.f32 %v3595_v42, %v3591_v37 }
 0x44e   : > { %v1162_v44 = vpack.c.bf16 %v1161_v23, %v1159_v43 }
 0x450   : > { %3302 = vmatmul.mubr.msk.bf16.vlgmr.msra.gmra.mrb[12].mxu1 %vm1139_vm1, %v1162_v44  ;;  %v1479_v44 = vsel %vm1139_vm1, %v4012_v31, -inf }
 0x451   : > { %3306 = vmatpush3.bf16.xpose.msra.mxu1 %v1211_v55  ;;  %3307 = vmatprep.mubr.msk.bf16.mxu1 %vm3727_vm0, %v3726_v28 }
 0x452   : > { %3311 = vmatprep.subr.bf16.mxu1 %v3726_v28 }
 0x458   : > { %3308 = vmatmul.mubr.bf16.vlgmr.msra.gmra.mrb[16].mxu1 %v1210_v54 }
 0x459   : > { %3312 = vmatpush3.bf16.msra.mxu1 %v1276_v9  ;;  %3313 = vmatprep.mubr.msk.bf16.mxu1 %vm3727_vm0, %v3726_v28  ;;  %v3470_v9 = vld [vmem:[%s3831_s14 + $0x40] sm:$0xff]  }
 0x45a   : > { %3317 = vmatprep.subr.bf16.mxu1 %v3726_v28  ;;  %3229 = vmatprep.subr.bf16.mxu0 %v3470_v9 }
 0x45b   : > { %3230 = vmatpush3.bf16.msra.mxu0 %v3471_v16 }
 0x45c   : > { %3231 = vmatprep.subr.bf16.mxu0 %v3472_v17 }
 0x45f   : > { %3232 = vmatpush3.bf16.msra.mxu0 %v3473_v18  ;;  %v3668_v18 = vld [vmem:[#allocation2] sm:$0xff] }
 0x460   : > { %3233 = vmatprep.subr.bf16.mxu0 %v3474_v19 }
 0x463   : > { %3234 = vmatpush3.bf16.msra.mxu0 %v3475_v20 }
 0x464   : > { %3235 = vmatprep.subr.bf16.mxu0 %v3476_v21  ;;  %v3669_v21 = vld [vmem:[#allocation2 + $0x8] sm:$0xff] }
 0x467   : > { %3236 = vmatpush3.bf16.msra.mxu0 %v3477_v22 }
 0x468   : > { %3237 = vmatprep.subr.bf16.mxu0 %v3478_v25 }
 0x46b   : > { %3238 = vmatpush3.bf16.msra.mxu0 %v3479_v26 }
 0x46c   : > { %3239 = vmatprep.subr.bf16.mxu0 %v3480_v27 }
 0x46f   : > { %3240 = vmatpush3.bf16.msra.mxu0 %v3481_v29 }
 0x470   : > { %3241 = vmatprep.subr.bf16.mxu0 %v3482_v30 }
 0x473   : > { %3242 = vmatpush3.bf16.msra.mxu0 %v3483_v32 }
 0x474   : > { %3243 = vmatprep.subr.bf16.mxu0 %v3484_v57 }
 0x477   : > { %3244 = vmatpush3.bf16.msra.mxu0 %v3485_v61 }
 0x523   : > { %v4031_v47 = vpop.f32.mrb[12].mxu1 }
 0x524   : > { %v3303_v48 = vpop.f32.mrb[13].mxu1 }
 0x525   : > { %v4033_v46 = vpop.f32.mrb[14].mxu1  ;;  %v1482_v48 = vsel %vm1139_vm1, %v4014_v33, -inf }
 0x526   : > { %v1557_v49 = vpack.c.bf16 %v4033_v46, %v4031_v47  ;;  %v3304_v51 = vpop.f32.mrb[15].mxu1 }
 0x52b   : > { %v1246_v53 = vpop.f32.mrb[16].mxu1 }
 0x52c   : > { %v3309_v55 = vpop.f32.mrb[17].mxu1  ;;  %v1253_v45 = vsel %vm1139_vm1, %v1246_v53, -inf }
 0x52d   : > { %1254 = vmax.xlane.f32.xlu0 %v1253_v45  ;;  %v1249_v52 = vpop.f32.mrb[18].mxu1 }
 0x52e   : > { %v3310_v54 = vpop.f32.mrb[19].mxu1  ;;  %v1256_v58 = vsel %vm1139_vm1, %v1249_v52, -inf }
 0x52f   : > { %1257 = vmax.xlane.f32.xlu1 %v1256_v58 }
 0x5ba   : > { %v1255_v59 = vpop.xlane.xlu0 %1254 }
 0x5bb   : > { %v1259_v0 = vsub.f32 %v1246_v53, %v1255_v59 }
 0x5bc   : > { %v1258_v1 = vpop.xlane.xlu1 %1257 }
 0x5bd   : > { %v1261_v2 = vmul.f32 1.442695, %v1259_v0  ;;  %v1260_v3 = vsub.f32 %v1249_v52, %v1258_v1 }
 0x5bf   : > { %3596 = vpow2.f32 %v1261_v2  ;;  %v1263_v4 = vmul.f32 1.442695, %v1260_v3 }
 0x5c1   : > { %3598 = vpow2.f32 %v1263_v4 }
 0x5c9   : > { %v3597_v5 = vpop.eup %3596 }
 0x5ca   : > { %v1265_v6 = vsel %vm1139_vm1, %v3597_v5, 0.0 }
 0x5cb   : > { %v3599_v7 = vpop.eup %3598  ;;  %1266 = vadd.xlane.f32.xlu0 %v1265_v6 }
 0x5cc   : > { %v1268_v8 = vsel %vm1139_vm1, %v3599_v7, 0.0 }
 0x5cd   : > { %1269 = vadd.xlane.f32.xlu1 %v1268_v8 }
 0x658   : > { %v1267_v34 = vpop.xlane.xlu0 %1266 }
 0x659   : > { %3600 = vrcp.f32 %v1267_v34 }
 0x65a   : > { %v1270_v35 = vpop.xlane.xlu1 %1269 }
 0x65b   : > { %3602 = vrcp.f32 %v1270_v35 }
 0x663   : > { %v3601_v36 = vpop.eup %3600 }
 0x664   : > { %v1272_v38 = vmul.f32 %v3601_v36, %v3597_v5 }
 0x665   : > { %v3603_v37 = vpop.eup %3602 }
 0x666   : > { %v1274_v39 = vmul.f32 %v3603_v37, %v3599_v7 }
 0x668   : > { %v1275_v40 = vpack.c.bf16 %v1274_v39, %v1272_v38 }
 0x66a   : > { %3314 = vmatmul.mubr.msk.bf16.vlgmr.msra.gmra.mrb[20].mxu1 %vm1139_vm1, %v1275_v40 }
 0x66b   : > { %3318 = vmatpush3.bf16.xpose.msra.mxu1 %v1324_v63  ;;  %3319 = vmatprep.mubr.msk.bf16.mxu1 %vm3727_vm0, %v3726_v28 }
 0x66c   : > { %3323 = vmatprep.subr.bf16.mxu1 %v3726_v28 }
 0x672   : > { %3320 = vmatmul.mubr.bf16.vlgmr.msra.gmra.mrb[24].mxu1 %v1323_v62 }
 0x673   : > { %3324 = vmatpush3.bf16.msra.mxu1 %v1389_v13  ;;  %3325 = vmatprep.mubr.msk.bf16.mxu1 %vm3727_vm0, %v3726_v28 }
 0x674   : > { %3335 = vmatprep.subr.bf16.mxu1 %v3726_v28 }
 0x73d   : > { %v1314_v63 = vpop.f32.mrb[20].mxu1 }
 0x73e   : > { %v3315_v41 = vpop.f32.mrb[21].mxu1 }
 0x73f   : > { %v1317_v42 = vpop.f32.mrb[22].mxu1 }
 0x740   : > { %v1558_v43 = vpack.c.bf16 %v1317_v42, %v1314_v63  ;;  %v3316_v23 = vpop.f32.mrb[23].mxu1 }
 0x742   : > { %1721 = vmatprep.mubr.bf16.mxu0 %v1558_v43 }
 0x743   : > { %1722 = vmatmul.mubr.bf16.vlgmr.msra.gmra.mrb[20].mxu0 %v1557_v49 }
 0x745   : > { %v1359_v56 = vpop.f32.mrb[24].mxu1 }
 0x746   : > { %v3321_v60 = vpop.f32.mrb[25].mxu1  ;;  %v1366_v62 = vsel %vm1139_vm1, %v1359_v56, -inf }
 0x747   : > { %1367 = vmax.xlane.f32.xlu0 %v1366_v62  ;;  %v1362_v10 = vpop.f32.mrb[26].mxu1  ;;  %v3488_v60 = vld [vmem:[%s3849_s11 + $0x4] ss:$24 sps:$4 sm:$0xff]   ;;  %v3489_v62 = vld [vmem:[%s3849_s11 + $0x8] ss:$24 sps:$4 sm:$0xff]  }
 0x748   : > { %v3322_v12 = vpop.f32.mrb[27].mxu1  ;;  %v1369_v13 = vsel %vm1139_vm1, %v1362_v10, -inf }
 0x749   : > { %1370 = vmax.xlane.f32.xlu1 %v1369_v13 }
 0x74b   : > { %1480 = vmax.xlane.f32.xlu0 %v1479_v44 }
 0x74d   : > { %1483 = vmax.xlane.f32.xlu1 %v1482_v48 }
 0x7d4   : > { %v1368_v47 = vpop.xlane.xlu0 %1367 }
 0x7d5   : > { %v1372_v46 = vsub.f32 %v1359_v56, %v1368_v47  ;;  %v3486_v56 = vld [vmem:[%s3849_s11] ss:$24 sps:$4 sm:$0xff]  }
 0x7d6   : > { %v1371_v49 = vpop.xlane.xlu1 %1370 }
 0x7d7   : > { %v1374_v51 = vmul.f32 1.442695, %v1372_v46  ;;  %v1373_v53 = vsub.f32 %v1362_v10, %v1371_v49  ;;  %v3491_v10 = vld [vmem:[%s3849_s11 + $0xc] ss:$24 sps:$4 sm:$0xff]  }
 0x7d8   : > { %v1481_v55 = vpop.xlane.xlu0 %1480  ;;  %2151 = vmatprep.subr.bf16.mxu0 %v3491_v10  ;;  %v3133_v10 = vld [vmem:[%s4425_s27] ss:$0 sm:$0xff] }
 0x7d9   : > { %3604 = vpow2.f32 %v1374_v51  ;;  %v1376_v45 = vmul.f32 1.442695, %v1373_v53  ;;  %v1485_v52 = vsub.f32 %v4012_v31, %v1481_v55  ;;  %2152 = vmatpush1.bf16.msra.mxu0 %v3489_v62 }
 0x7da   : > { %v1484_v54 = vpop.xlane.xlu1 %1483 }
 0x7db   : > { %3606 = vpow2.f32 %v1376_v45  ;;  %v1487_v58 = vmul.f32 1.442695, %v1485_v52  ;;  %v1486_v59 = vsub.f32 %v4014_v33, %v1484_v54  ;;  %v3670_v45 = vld [vmem:[#allocation2 + $0x10] sm:$0xff] }
 0x7dd   : > { %3608 = vpow2.f32 %v1487_v58  ;;  %v1489_v0 = vmul.f32 1.442695, %v1486_v59 }
 0x7df   : > { %3610 = vpow2.f32 %v1489_v0 }
 0x7e3   : > { %v3605_v1 = vpop.eup %3604 }
 0x7e4   : > { %v1378_v2 = vsel %vm1139_vm1, %v3605_v1, 0.0 }
 0x7e5   : > { %v3607_v3 = vpop.eup %3606  ;;  %1379 = vadd.xlane.f32.xlu0 %v1378_v2  ;;  %v3494_v2 = vld [vmem:[%s3849_s11 + $0x34] ss:$24 sps:$4 sm:$0xff]  }
 0x7e6   : > { %v1381_v4 = vsel %vm1139_vm1, %v3607_v3, 0.0 }
 0x7e7   : > { %v3609_v5 = vpop.eup %3608  ;;  %1382 = vadd.xlane.f32.xlu1 %v1381_v4  ;;  %v3495_v4 = vld [vmem:[%s3849_s11 + $0x38] ss:$24 sps:$4 sm:$0xff]  }
 0x7e8   : > { %v1491_v6 = vsel %vm1139_vm1, %v3609_v5, 0.0 }
 0x7e9   : > { %v3611_v31 = vpop.eup %3610  ;;  %1492 = vadd.xlane.f32.xlu0 %v1491_v6  ;;  %v3503_v6 = vld [vmem:[%s3849_s11 + $0x6c] ss:$24 sps:$4 sm:$0xff]  }
 0x7ea   : > { %v1494_v7 = vsel %vm1139_vm1, %v3611_v31, 0.0 }
 0x7eb   : > { %1495 = vadd.xlane.f32.xlu1 %v1494_v7  ;;  %v3501_v7 = vld [vmem:[%s3849_s11 + $0x68] ss:$24 sps:$4 sm:$0xff]  }
 0x816   : > { %v3245_v33 = vpop.f32.mrb[20].mxu0 }
 0x817   : > { %v3246_v8 = vpop.f32.mrb[21].mxu0 }
 0x818   : > { %v3247_v9 = vadd.f32 %v3246_v8, %v3245_v33  ;;  %v3248_v16 = vpop.f32.mrb[22].mxu0  ;;  %v3506_v33 = vld [vmem:[%s3849_s11 + $0x94] ss:$24 sps:$4 sm:$0xff]  }
 0x819   : > { %v3249_v17 = vpop.f32.mrb[23].mxu0  ;;  %v3509_v8 = vld [vmem:[%s3849_s11 + $0x9c] ss:$24 sps:$4 sm:$0xff]  }
 0x81a   : > { %v4088_v19 = vadd.f32 %v3668_v18, %v3247_v9  ;;  %v3250_v20 = vadd.f32 %v3249_v17, %v3248_v16  ;;  %v3504_v9 = vld [vmem:[%s3849_s11 + $0x90] ss:$24 sps:$4 sm:$0xff]   ;;  %v3512_v17 = vld [vmem:[%s3849_s11 + $0xc4] ss:$24 sps:$4 sm:$0xff]  }
 0x81b   : > { %v3507_v16 = vld [vmem:[%s3849_s11 + $0x98] ss:$24 sps:$4 sm:$0xff]   ;;  %v3515_v18 = vld [vmem:[%s3849_s11 + $0xcc] ss:$24 sps:$4 sm:$0xff]  }
 0x81c   : > { %v4090_v22 = vadd.f32 %v3669_v21, %v3250_v20  ;;  %1744 = vadd.xlane.f32.xlu0 %v4088_v19  ;;  %v3510_v20 = vld [vmem:[%s3849_s11 + $0xc0] ss:$24 sps:$4 sm:$0xff]  }
 0x81d   : > { %v3513_v21 = vld [vmem:[%s3849_s11 + $0xc8] ss:$24 sps:$4 sm:$0xff]  }
 0x81e   : > { %1746 = vadd.xlane.f32.xlu1 %v4090_v22 }
 0x872   : > { %v1380_v25 = vpop.xlane.xlu0 %1379 }
 0x873   : > { %3612 = vrcp.f32 %v1380_v25  ;;  %v3518_v25 = vld [vmem:[%s3849_s11 + $0xf4] ss:$24 sps:$4 sm:$0xff]  }
 0x874   : > { %v1383_v26 = vpop.xlane.xlu1 %1382 }
 0x875   : > { %3614 = vrcp.f32 %v1383_v26  ;;  %v3521_v26 = vld [vmem:[%s3849_s11 + $0xfc] ss:$24 sps:$4 sm:$0xff]  }
 0x876   : > { %v1493_v27 = vpop.xlane.xlu0 %1492 }
 0x878   : > { %v1496_v29 = vpop.xlane.xlu1 %1495 }
 0x879   : > { %3616 = vrcp.f32 %v1496_v29  ;;  %v3519_v29 = vld [vmem:[%s3849_s11 + $0xf8] ss:$24 sps:$4 sm:$0xff]  }
 0x87a   : > { %3618 = vrcp.f32 %v1493_v27  ;;  %v3516_v27 = vld [vmem:[%s3849_s11 + $0xf0] ss:$24 sps:$4 sm:$0xff]  }
 0x87d   : > { %v3613_v30 = vpop.eup %3612 }
 0x87e   : > { %v1385_v34 = vmul.f32 %v3613_v30, %v3605_v1  ;;  %v3524_v30 = vld [vmem:[%s3849_s11 + $0x124] ss:$24 sps:$4 sm:$0xff]  }
 0x87f   : > { %v3615_v32 = vpop.eup %3614 }
 0x880   : > { %v1387_v35 = vmul.f32 %v3615_v32, %v3607_v3  ;;  %v3497_v3 = vld [vmem:[%s3849_s11 + $0x3c] ss:$24 sps:$4 sm:$0xff]   ;;  %v3527_v32 = vld [vmem:[%s3849_s11 + $0x12c] ss:$24 sps:$4 sm:$0xff]  }
 0x881   : > { %2153 = vmatprep.subr.bf16.mxu0 %v3497_v3  ;;  %v3543_v3 = vld [vmem:[%s3849_s11 + $0xa0] ss:$24 sps:$4 sm:$0xff]  }
 0x882   : > { %v1388_v36 = vpack.c.bf16 %v1387_v35, %v1385_v34  ;;  %2154 = vmatpush1.bf16.msra.mxu0 %v3495_v4  ;;  %v3522_v34 = vld [vmem:[%s3849_s11 + $0x120] ss:$24 sps:$4 sm:$0xff]   ;;  %v3546_v4 = vld [vmem:[%s3849_s11 + $0xd0] ss:$24 sps:$4 sm:$0xff]  }
 0x883   : > { %v3617_v37 = vpop.eup %3616  ;;  %2155 = vmatprep.subr.bf16.mxu0 %v3503_v6  ;;  %v3525_v35 = vld [vmem:[%s3849_s11 + $0x128] ss:$24 sps:$4 sm:$0xff]  }
 0x884   : > { %3326 = vmatmul.mubr.msk.bf16.vlgmr.msra.gmra.mrb[28].mxu1 %vm1139_vm1, %v1388_v36  ;;  %v3619_v38 = vpop.eup %3618  ;;  %v1500_v39 = vmul.f32 %v3617_v37, %v3611_v31  ;;  %v3498_v31 = vld [vmem:[%s3849_s11 + $0x60] ss:$24 sps:$4 sm:$0xff]   ;;  %v3530_v36 = vld [vmem:[%s3849_s11 + $0x154] ss:$24 sps:$4 sm:$0xff]  }
 0x885   : > { %3336 = vmatpush3.bf16.msra.mxu1 %v1502_v15  ;;  %3337 = vmatprep.mubr.msk.bf16.mxu1 %vm3727_vm0, %v3726_v28  ;;  %v1498_v40 = vmul.f32 %v3619_v38, %v3609_v5  ;;  %v3500_v5 = vld [vmem:[%s3849_s11 + $0x64] ss:$24 sps:$4 sm:$0xff]   ;;  %v3528_v38 = vld [vmem:[%s3849_s11 + $0x150] ss:$24 sps:$4 sm:$0xff]   ;;  %v3549_v6 = vld [vmem:[%s3849_s11 + $0x100] ss:$24 sps:$4 sm:$0xff]  }
 0x886   : > { %2098 = vmatprep.subr.bf16.mxu1 %v3488_v60  ;;  %2156 = vmatpush1.bf16.msra.mxu0 %v3501_v7  ;;  %v3533_v37 = vld [vmem:[%s3849_s11 + $0x15c] ss:$24 sps:$4 sm:$0xff]   ;;  %v3552_v7 = vld [vmem:[%s3849_s11 + $0x130] ss:$24 sps:$4 sm:$0xff]  }
 0x887   : > { %v1501_v57 = vpack.c.bf16 %v1500_v39, %v1498_v40  ;;  %2157 = vmatprep.subr.bf16.mxu0 %v3509_v8  ;;  %v3531_v39 = vld [vmem:[%s3849_s11 + $0x158] ss:$24 sps:$4 sm:$0xff]  }
 0x888   : > { %v3555_v8 = vld [vmem:[%s3849_s11 + $0x160] ss:$24 sps:$4 sm:$0xff]  }
 0x88a   : > { %2158 = vmatpush1.bf16.msra.mxu0 %v3507_v16 }
 0x88b   : > { %2159 = vmatprep.subr.bf16.mxu0 %v3515_v18 }
 0x88c   : > { %3338 = vmatmul.mubr.msk.bf16.vlgmr.msra.gmra.mrb[32].mxu1 %vm1139_vm1, %v1501_v57 }
 0x88d   : > { %2130 = vmatprep.mubr.bf16.mxu1 %v3725_v50  ;;  %2099 = vmatpush1.bf16.msra.mxu1 %v3486_v56 }
 0x88e   : > { %2100 = vmatprep.subr.bf16.mxu1 %v3494_v2  ;;  %2160 = vmatpush1.bf16.msra.mxu0 %v3513_v21  ;;  %v3545_v2 = vld [vmem:[%s3849_s11 + $0xa4] ss:$24 sps:$4 sm:$0xff]  }
 0x88f   : > { %2161 = vmatprep.subr.bf16.mxu0 %v3521_v26 }
 0x892   : > { %2162 = vmatpush1.bf16.msra.mxu0 %v3519_v29 }
 0x893   : > { %2163 = vmatprep.subr.bf16.mxu0 %v3527_v32 }
 0x896   : > { %2164 = vmatpush1.bf16.msra.mxu0 %v3525_v35 }
 0x897   : > { %2165 = vmatprep.subr.bf16.mxu0 %v3533_v37 }
 0x89a   : > { %2166 = vmatpush1.bf16.msra.mxu0 %v3531_v39 }
 0x8a9   : > { %v1745_v12 = vpop.xlane.xlu0 %1744 }
 0x8aa   : > { %v1752_v44 = vmul.f32 0.0078125, %v1745_v12 }
 0x8ab   : > { %v1747_v13 = vpop.xlane.xlu1 %1746 }
 0x8ac   : > { %v1753_v46 = vmul.f32 0.0078125, %v1747_v13  ;;  %v4108_v55 = vsub.f32 %v4088_v19, %v1752_v44  ;;  %v3536_v44 = vld [vmem:[%s3849_s11 + $0x14] ss:$24 sps:$4 sm:$0xff]  }
 0x8ae   : > { %v4113_v58 = vsub.f32 %v4090_v22, %v1753_v46  ;;  %v1760_v0 = vmul.f32 %v4108_v55, %v4108_v55  ;;  %v3134_v46 = vld [vmem:[%s543_s26] ss:$0 sm:$0xff] }
 0x8b0   : > { %v1761_v1 = vmul.f32 %v4113_v58, %v4113_v58 }
 0x957   : > { %v1427_v61 = vpop.f32.mrb[28].mxu1 }
 0x958   : > { %v3327_v63 = vpop.f32.mrb[29].mxu1 }
 0x959   : > { %v1430_v41 = vpop.f32.mrb[30].mxu1 }
 0x95a   : > { %v1559_v42 = vpack.c.bf16 %v1430_v41, %v1427_v61  ;;  %v3328_v11 = vpop.f32.mrb[31].mxu1 }
 0x95f   : > { %v1540_v14 = vpop.f32.mrb[32].mxu1 }
 0x960   : > { %v3339_v15 = vpop.f32.mrb[33].mxu1 }
 0x961   : > { %v1543_v43 = vpop.f32.mrb[34].mxu1 }
 0x962   : > { %v1560_v28 = vpack.c.bf16 %v1543_v43, %v1540_v14  ;;  %v3340_v23 = vpop.f32.mrb[35].mxu1 }
 0x964   : > { %1729 = vmatprep.mubr.bf16.mxu0 %v1560_v28 }
 0x965   : > { %1730 = vmatmul.mubr.bf16.gmra.mrb[24].mxu0 %v1559_v42 }
 0x966   : > { %2183 = vmatprep.mubr.bf16.mxu0 %v3725_v50 }
 0xa38   : > { %v3251_v48 = vpop.f32.mrb[24].mxu0 }
 0xa39   : > { %v3252_v47 = vpop.f32.mrb[25].mxu0 }
 0xa3a   : > { %v3253_v49 = vadd.f32 %v3252_v47, %v3251_v48  ;;  %v3254_v51 = vpop.f32.mrb[26].mxu0 }
 0xa3b   : > { %v3255_v53 = vpop.f32.mrb[27].mxu0 }
 0xa3c   : > { %v4110_v52 = vadd.f32 %v3670_v45, %v3253_v49  ;;  %v3256_v54 = vadd.f32 %v3255_v53, %v3254_v51  ;;  %v3534_v45 = vld [vmem:[%s3849_s11 + $0x10] ss:$24 sps:$4 sm:$0xff]  }
 0xa3e   : > { %v4116_v59 = vadd.f32 %v3256_v54, %v3897_v24  ;;  %1748 = vadd.xlane.f32.xlu0 %v4110_v52  ;;  %v3492_v24 = vld [vmem:[%s3849_s11 + $0x30] ss:$24 sps:$4 sm:$0xff]   ;;  %v3539_v54 = vld [vmem:[%s3849_s11 + $0x44] ss:$24 sps:$4 sm:$0xff]  }
 0xa3f   : > { %2101 = vmatpush1.bf16.msra.mxu1 %v3492_v24  ;;  %v3548_v24 = vld [vmem:[%s3849_s11 + $0xd4] ss:$24 sps:$4 sm:$0xff]  }
 0xa40   : > { %1750 = vadd.xlane.f32.xlu1 %v4116_v59  ;;  %2102 = vmatprep.subr.bf16.mxu1 %v3500_v5  ;;  %v3551_v5 = vld [vmem:[%s3849_s11 + $0x104] ss:$24 sps:$4 sm:$0xff]  }
 0xa42   : > { %1764 = vadd.xlane.f32.xlu0 %v1760_v0  ;;  %v3542_v0 = vld [vmem:[%s3849_s11 + $0x74] ss:$24 sps:$4 sm:$0xff]  }
 0xa43   : > { %2103 = vmatpush1.bf16.msra.mxu1 %v3498_v31  ;;  %v3554_v31 = vld [vmem:[%s3849_s11 + $0x134] ss:$24 sps:$4 sm:$0xff]  }
 0xa44   : > { %1766 = vadd.xlane.f32.xlu1 %v1761_v1  ;;  %2104 = vmatprep.subr.bf16.mxu1 %v3506_v33  ;;  %v3540_v1 = vld [vmem:[%s3849_s11 + $0x70] ss:$24 sps:$4 sm:$0xff]   ;;  %v3557_v33 = vld [vmem:[%s3849_s11 + $0x164] ss:$24 sps:$4 sm:$0xff]  }
 0xa47   : > { %2105 = vmatpush1.bf16.msra.mxu1 %v3504_v9 }
 0xa48   : > { %2106 = vmatprep.subr.bf16.mxu1 %v3512_v17 }
 0xa4b   : > { %2107 = vmatpush1.bf16.msra.mxu1 %v3510_v20 }
 0xa4c   : > { %2108 = vmatprep.subr.bf16.mxu1 %v3518_v25 }
 0xa4f   : > { %2109 = vmatpush1.bf16.msra.mxu1 %v3516_v27 }
 0xa50   : > { %2110 = vmatprep.subr.bf16.mxu1 %v3524_v30 }
 0xa53   : > { %2111 = vmatpush1.bf16.msra.mxu1 %v3522_v34 }
 0xa54   : > { %2112 = vmatprep.subr.bf16.mxu1 %v3530_v36 }
 0xa57   : > { %2113 = vmatpush1.bf16.msra.mxu1 %v3528_v38 }
 0xa58   : > { %2204 = vmatprep.subr.bf16.mxu1 %v3536_v44 }
 0xacb   : > { %v1749_v40 = vpop.xlane.xlu0 %1748 }
 0xacc   : > { %v1754_v57 = vmul.f32 0.0078125, %v1749_v40 }
 0xacd   : > { %v1751_v61 = vpop.xlane.xlu1 %1750 }
 0xace   : > { %v4153_v63 = vsub.f32 %v4110_v52, %v1754_v57  ;;  %v1755_v41 = vmul.f32 0.0078125, %v1751_v61 }
 0xacf   : > { %v1765_v42 = vpop.xlane.xlu0 %1764 }
 0xad0   : > { %v4156_v11 = vsub.f32 %v4116_v59, %v1755_v41  ;;  %v1772_v14 = vmul.f32 0.0078125, %v1765_v42  ;;  %v1762_v15 = vmul.f32 %v4153_v63, %v4153_v63 }
 0xad1   : > { %v1767_v43 = vpop.xlane.xlu1 %1766 }
 0xad2   : > { %v1776_v28 = vadd.f32 1e-05, %v1772_v14  ;;  %v1773_v23 = vmul.f32 0.0078125, %v1767_v43  ;;  %1768 = vadd.xlane.f32.xlu0 %v1762_v15  ;;  %v1763_v56 = vmul.f32 %v4156_v11, %v4156_v11 }
 0xad4   : > { %3620 = vrsqrt.f32 %v1776_v28  ;;  %v1777_v60 = vadd.f32 1e-05, %v1773_v23  ;;  %1770 = vadd.xlane.f32.xlu1 %v1763_v56 }
 0xad6   : > { %3622 = vrsqrt.f32 %v1777_v60 }
 0xade   : > { %v3621_v62 = vpop.eup %3620 }
 0xadf   : > { %v1784_v12 = vmul.f32 %v3621_v62, %v4108_v55 }
 0xae0   : > { %v3623_v13 = vpop.eup %3622 }
 0xae1   : > { %v1785_v48 = vmul.f32 %v3623_v13, %v4113_v58  ;;  %v1794_v47 = vmul.f32 %v3133_v10, %v1784_v12  ;;  %v3537_v58 = vld [vmem:[%s3849_s11 + $0x40] ss:$24 sps:$4 sm:$0xff]   ;;  %s3728_s11 = smov 43  }
 0xae3   : > { %v1795_v49 = vmul.f32 %v3133_v10, %v1785_v48  ;;  %v1804_v51 = vadd.f32 %v3134_v46, %v1794_v47 }
 0xae5   : > { %v1805_v53 = vadd.f32 %v3134_v46, %v1795_v49 }
 0xae7   : > { %v1808_v55 = vpack.c.bf16 %v1805_v53, %v1804_v51 }
 0xae9   : > { %2131 = vmatmul.mubr.bf16.vlgmr.msra.gmra.mrb[36].mxu1 %v1808_v55  ;;  %2184 = vmatmul.mubr.bf16.vlgmr.msra.gmra.mrb[28].mxu0 %v1808_v55 }
 0xaea   : > { %2205 = vmatpush1.bf16.msra.mxu1 %v3534_v45  ;;  %2140 = vmatprep.mubr.bf16.mxu1 %v3725_v50 }
 0xaeb   : > { %2206 = vmatprep.subr.bf16.mxu1 %v3539_v54  ;;  %2193 = vmatprep.mubr.bf16.mxu0 %v3725_v50 }
 0xaee   : > { %2207 = vmatpush1.bf16.msra.mxu1 %v3537_v58 }
 0xaef   : > { %2208 = vmatprep.subr.bf16.mxu1 %v3542_v0 }
 0xaf2   : > { %2209 = vmatpush1.bf16.msra.mxu1 %v3540_v1 }
 0xaf3   : > { %2210 = vmatprep.subr.bf16.mxu1 %v3545_v2 }
 0xaf6   : > { %2211 = vmatpush1.bf16.msra.mxu1 %v3543_v3 }
 0xaf7   : > { %2212 = vmatprep.subr.bf16.mxu1 %v3548_v24 }
 0xafa   : > { %2213 = vmatpush1.bf16.msra.mxu1 %v3546_v4 }
 0xafb   : > { %2214 = vmatprep.subr.bf16.mxu1 %v3551_v5 }
 0xafe   : > { %2215 = vmatpush1.bf16.msra.mxu1 %v3549_v6 }
 0xaff   : > { %2216 = vmatprep.subr.bf16.mxu1 %v3554_v31 }
 0xb02   : > { %2217 = vmatpush1.bf16.msra.mxu1 %v3552_v7 }
 0xb03   : > { %2218 = vmatprep.subr.bf16.mxu1 %v3557_v33 }
 0xb06   : > { %2219 = vmatpush1.bf16.msra.mxu1 %v3555_v8 }
 0xb5f   : > { %v1769_v9 = vpop.xlane.xlu0 %1768 }
 0xb60   : > { %v1774_v16 = vmul.f32 0.0078125, %v1769_v9 }
 0xb61   : > { %v1771_v17 = vpop.xlane.xlu1 %1770 }
 0xb62   : > { %v1778_v18 = vadd.f32 1e-05, %v1774_v16  ;;  %v1775_v20 = vmul.f32 0.0078125, %v1771_v17 }
 0xb64   : > { %3624 = vrsqrt.f32 %v1778_v18  ;;  %v1779_v21 = vadd.f32 1e-05, %v1775_v20 }
 0xb66   : > { %3626 = vrsqrt.f32 %v1779_v21 }
 0xb6e   : > { %v3625_v25 = vpop.eup %3624 }
 0xb6f   : > { %v1786_v26 = vmul.f32 %v3625_v25, %v4153_v63 }
 0xb70   : > { %v3627_v27 = vpop.eup %3626 }
 0xb71   : > { %v1787_v29 = vmul.f32 %v3627_v27, %v4156_v11  ;;  %v1796_v30 = vmul.f32 %v3133_v10, %v1786_v26 }
 0xb73   : > { %v1797_v32 = vmul.f32 %v3133_v10, %v1787_v29  ;;  %v1806_v34 = vadd.f32 %v3134_v46, %v1796_v30 }
 0xb75   : > { %v1807_v35 = vadd.f32 %v3134_v46, %v1797_v32 }
 0xb77   : > { %v1809_v36 = vpack.c.bf16 %v1807_v35, %v1806_v34 }
 0xb79   : > { %2141 = vmatmul.mubr.bf16.gmra.mrb[40].mxu1 %v1809_v36  ;;  %2194 = vmatmul.mubr.bf16.gmra.mrb[32].mxu0 %v1809_v36 }
 0xb7a   : > { %2236 = vmatprep.mubr.bf16.mxu1 %v3725_v50 }
 0xb81   : > { %2237 = vmatmul.mubr.bf16.vlgmr.msra.gmra.mrb[44].mxu1 %v1808_v55 }
 0xb82   : > { %2246 = vmatprep.mubr.bf16.mxu1 %v3725_v50 }
 0xb89   : > { %2247 = vmatmul.mubr.bf16.gmra.mrb[48].mxu1 %v1809_v36 }
 0xbbc   : > { %v4196_v37 = vpop.f32.mrb[36].mxu1  ;;  %v4198_v38 = vpop.f32.mrb[28].mxu0 }
 0xbbd   : > { %v2273_v39 = vmul.f32 0.70710677, %v4198_v38  ;;  %v4201_v40 = vpop.f32.mrb[37].mxu1  ;;  %v2187_v57 = vpop.f32.mrb[29].mxu0  ;;  %v2257_v28 = vmul.f32 0.5, %v4198_v38 }
 0xbbe   : > { %v2274_v61 = vmul.f32 0.70710677, %v2187_v57  ;;  %v4203_v63 = vpop.f32.mrb[38].mxu1  ;;  %v4205_v41 = vpop.f32.mrb[30].mxu0  ;;  %v2258_v60 = vmul.f32 0.5, %v2187_v57 }
 0xbbf   : > { %3628 = verf.f32 %v2273_v39  ;;  %v2277_v42 = vmul.f32 0.70710677, %v4205_v41  ;;  %v4208_v11 = vpop.f32.mrb[39].mxu1  ;;  %v2191_v50 = vpop.f32.mrb[31].mxu0  ;;  %v2261_v46 = vmul.f32 0.5, %v4205_v41 }
 0xbc0   : > { %3630 = verf.f32 %v2274_v61  ;;  %v2278_v14 = vmul.f32 0.70710677, %v2191_v50  ;;  %v2262_v44 = vmul.f32 0.5, %v2191_v50 }
 0xbc1   : > { %3632 = verf.f32 %v2277_v42 }
 0xbc2   : > { %3634 = verf.f32 %v2278_v14 }
 0xbc9   : > { %v3629_v15 = vpop.eup %3628 }
 0xbca   : > { %v3631_v43 = vpop.eup %3630  ;;  %v2305_v23 = vadd.f32 1.0, %v3629_v15 }
 0xbcb   : > { %v3633_v56 = vpop.eup %3632  ;;  %v2306_v62 = vadd.f32 1.0, %v3631_v43 }
 0xbcc   : > { %v3635_v10 = vpop.eup %3634  ;;  %v2321_v12 = vmul.f32 %v2305_v23, %v2257_v28  ;;  %v2309_v47 = vadd.f32 1.0, %v3633_v56 }
 0xbcd   : > { %v2322_v13 = vmul.f32 %v2306_v62, %v2258_v60  ;;  %v2310_v48 = vadd.f32 1.0, %v3635_v10 }
 0xbce   : > { %2353 = vrot.lane.b32.xlu0 %v2321_v12, %s3728_s11  ;;  %v2325_v51 = vmul.f32 %v2309_v47, %v2261_v46 }
 0xbcf   : > { %v2326_v49 = vmul.f32 %v2310_v48, %v2262_v44  ;;  %2355 = vrot.lane.b32.xlu1 %v2322_v13, %s3728_s11 }
 0xbd2   : > { %2363 = vrot.lane.b32.xlu0 %v2326_v49, %s3728_s11 }
 0xbd3   : > { %2361 = vrot.lane.b32.xlu1 %v2325_v51, %s3728_s11 }
 0xc4c   : > { %v4216_v53 = vpop.f32.mrb[40].mxu1  ;;  %v4218_v45 = vpop.f32.mrb[32].mxu0 }
 0xc4d   : > { %v2281_v55 = vmul.f32 0.70710677, %v4218_v45  ;;  %v4221_v54 = vpop.f32.mrb[41].mxu1  ;;  %v2197_v58 = vpop.f32.mrb[33].mxu0  ;;  %v2265_v21 = vmul.f32 0.5, %v4218_v45 }
 0xc4e   : > { %v2282_v0 = vmul.f32 0.70710677, %v2197_v58  ;;  %v4223_v1 = vpop.f32.mrb[42].mxu1  ;;  %v4225_v2 = vpop.f32.mrb[34].mxu0  ;;  %v2266_v27 = vmul.f32 0.5, %v2197_v58 }
 0xc4f   : > { %3636 = verf.f32 %v2281_v55  ;;  %v2285_v3 = vmul.f32 0.70710677, %v4225_v2  ;;  %v4228_v24 = vpop.f32.mrb[43].mxu1  ;;  %v2201_v4 = vpop.f32.mrb[35].mxu0  ;;  %v2269_v15 = vmul.f32 0.5, %v4225_v2 }
 0xc50   : > { %3638 = verf.f32 %v2282_v0  ;;  %v2286_v5 = vmul.f32 0.70710677, %v2201_v4  ;;  %v2270_v32 = vmul.f32 0.5, %v2201_v4 }
 0xc51   : > { %3640 = verf.f32 %v2285_v3 }
 0xc52   : > { %3642 = verf.f32 %v2286_v5 }
 0xc54   : > { %v2238_v6 = vpop.f32.mrb[44].mxu1 }
 0xc55   : > { %v2275_v31 = vmul.f32 0.70710677, %v2238_v6  ;;  %v2240_v7 = vpop.f32.mrb[45].mxu1  ;;  %v2259_v12 = vmul.f32 0.5, %v2238_v6 }
 0xc56   : > { %v2276_v33 = vmul.f32 0.70710677, %v2240_v7  ;;  %v2242_v8 = vpop.f32.mrb[46].mxu1  ;;  %v2260_v48 = vmul.f32 0.5, %v2240_v7 }
 0xc57   : > { %3644 = verf.f32 %v2275_v31  ;;  %v2279_v9 = vmul.f32 0.70710677, %v2242_v8  ;;  %v2244_v16 = vpop.f32.mrb[47].mxu1  ;;  %v2263_v58 = vmul.f32 0.5, %v2242_v8 }
 0xc58   : > { %3646 = verf.f32 %v2276_v33  ;;  %v2280_v17 = vmul.f32 0.70710677, %v2244_v16  ;;  %v2264_v33 = vmul.f32 0.5, %v2244_v16 }
 0xc59   : > { %v3637_v18 = vpop.eup %3636  ;;  %3648 = verf.f32 %v2279_v9 }
 0xc5a   : > { %v3639_v20 = vpop.eup %3638  ;;  %v2313_v25 = vadd.f32 1.0, %v3637_v18  ;;  %3650 = verf.f32 %v2280_v17 }
 0xc5b   : > { %v3641_v26 = vpop.eup %3640  ;;  %v2314_v29 = vadd.f32 1.0, %v3639_v20 }
 0xc5c   : > { %v3643_v30 = vpop.eup %3642  ;;  %v2248_v34 = vpop.f32.mrb[48].mxu1  ;;  %v2329_v35 = vmul.f32 %v2313_v25, %v2265_v21  ;;  %v2317_v42 = vadd.f32 1.0, %v3641_v26 }
 0xc5d   : > { %v2330_v36 = vmul.f32 %v2314_v29, %v2266_v27  ;;  %v2318_v39 = vadd.f32 1.0, %v3643_v30  ;;  %v2283_v57 = vmul.f32 0.70710677, %v2248_v34  ;;  %v2250_v61 = vpop.f32.mrb[49].mxu1  ;;  %v2267_v6 = vmul.f32 0.5, %v2248_v34  ;;  %v2356_v34 = vpop.permute.xlu1 %2355 }
 0xc5e   : > { %v2284_v50 = vmul.f32 0.70710677, %v2250_v61  ;;  %2369 = vrot.lane.b32.xlu0 %v2329_v35, %s3728_s11  ;;  %v2252_v14 = vpop.f32.mrb[50].mxu1  ;;  %v2333_v62 = vmul.f32 %v2317_v42, %v2269_v15  ;;  %v2268_v8 = vmul.f32 0.5, %v2250_v61 }
 0xc5f   : > { %v2334_v43 = vmul.f32 %v2318_v39, %v2270_v32  ;;  %3652 = verf.f32 %v2283_v57  ;;  %v2287_v28 = vmul.f32 0.70710677, %v2252_v14  ;;  %2371 = vrot.lane.b32.xlu1 %v2330_v36, %s3728_s11  ;;  %v2254_v23 = vpop.f32.mrb[51].mxu1  ;;  %v2271_v25 = vmul.f32 0.5, %v2252_v14  ;;  %v2354_v32 = vpop.permute.xlu0 %2353 }
 0xc60   : > { %3654 = verf.f32 %v2284_v50  ;;  %v2288_v56 = vmul.f32 0.70710677, %v2254_v23  ;;  %v2272_v30 = vmul.f32 0.5, %v2254_v23  ;;  %v2386_v50 = vsel %vm2385_vm2, %v2354_v32, %v2356_v34 }
 0xc61   : > { %v3645_v60 = vpop.eup %3644  ;;  %3656 = verf.f32 %v2287_v28  ;;  %v2362_v36 = vpop.permute.xlu1 %2361  ;;  %v2410_v23 = vmul.f32 %v2386_v50, %v4196_v37 }
 0xc62   : > { %v3647_v10 = vpop.eup %3646  ;;  %v2307_v13 = vadd.f32 1.0, %v3645_v60  ;;  %2379 = vrot.lane.b32.xlu0 %v2334_v43, %s3728_s11  ;;  %3658 = verf.f32 %v2288_v56 }
 0xc63   : > { %v3649_v44 = vpop.eup %3648  ;;  %v2308_v47 = vadd.f32 1.0, %v3647_v10  ;;  %2377 = vrot.lane.b32.xlu1 %v2333_v62, %s3728_s11  ;;  %v2364_v35 = vpop.permute.xlu0 %2363 }
 0xc64   : > { %v2323_v46 = vmul.f32 %v2307_v13, %v2259_v12  ;;  %v2311_v51 = vadd.f32 1.0, %v3649_v44  ;;  %v3651_v55 = vpop.eup %3650  ;;  %v2389_v44 = vsel %vm2385_vm2, %v2362_v36, %v2364_v35 }
 0xc65   : > { %v2324_v49 = vmul.f32 %v2308_v47, %v2260_v48  ;;  %v2312_v4 = vadd.f32 1.0, %v3651_v55  ;;  %v2413_v37 = vmul.f32 %v2389_v44, %v4203_v63 }
 0xc66   : > { %v2327_v3 = vmul.f32 %v2311_v51, %v2263_v58 }
 0xc67   : > { %2357 = vrot.lane.b32.xlu1 %v2323_v46, %s3728_s11  ;;  %2359 = vrot.lane.b32.xlu0 %v2324_v49, %s3728_s11  ;;  %v2328_v18 = vmul.f32 %v2312_v4, %v2264_v33 }
 0xc69   : > { %v3653_v0 = vpop.eup %3652 }
 0xc6a   : > { %v3655_v5 = vpop.eup %3654  ;;  %v2315_v31 = vadd.f32 1.0, %v3653_v0 }
 0xc6b   : > { %v3657_v7 = vpop.eup %3656  ;;  %2365 = vrot.lane.b32.xlu1 %v2327_v3, %s3728_s11  ;;  %v2316_v17 = vadd.f32 1.0, %v3655_v5 }
 0xc6c   : > { %v2331_v9 = vmul.f32 %v2315_v31, %v2267_v6  ;;  %v2319_v20 = vadd.f32 1.0, %v3657_v7  ;;  %v3659_v21 = vpop.eup %3658 }
 0xc6d   : > { %v2332_v26 = vmul.f32 %v2316_v17, %v2268_v8  ;;  %v2320_v29 = vadd.f32 1.0, %v3659_v21 }
 0xc6e   : > { %2373 = vrot.lane.b32.xlu0 %v2331_v9, %s3728_s11  ;;  %v2335_v27 = vmul.f32 %v2319_v20, %v2271_v25 }
 0xc6f   : > { %2367 = vrot.lane.b32.xlu1 %v2328_v18, %s3728_s11  ;;  %v2336_v16 = vmul.f32 %v2320_v29, %v2272_v30 }
 0xc72   : > { %2375 = vrot.lane.b32.xlu0 %v2332_v26, %s3728_s11  ;;  %v3558_v26 = vld [vmem:[%s3866_s25 + $0x40] sm:$0xff]  }
 0xc73   : > { %2381 = vrot.lane.b32.xlu1 %v2335_v27, %s3728_s11  ;;  %3257 = vmatprep.subr.bf16.mxu0 %v3558_v26  ;;  %v3574_v26 = vld [vmem:[%s3866_s25 + $0x30] sm:$0xff]  }
 0xc77   : > { %2383 = vrot.lane.b32.xlu1 %v2336_v16, %s3728_s11 }
 0xcd0   : > { %v2370_v39 = vpop.permute.xlu0 %2369 }
 0xcd1   : > { %v2372_v57 = vpop.permute.xlu1 %2371 }
 0xcd4   : > { %v2380_v61 = vpop.permute.xlu0 %2379 }
 0xcd5   : > { %v2378_v42 = vpop.permute.xlu1 %2377 }
 0xcd6   : > { %v2395_v33 = vsel %vm2385_vm2, %v2378_v42, %v2380_v61 }
 0xcd7   : > { %v2419_v18 = vmul.f32 %v2395_v33, %v4223_v1  ;;  %v3562_v33 = vld [vmem:[%s3866_s25 + $0x50] sm:$0xff]  }
 0xcd9   : > { %v2358_v14 = vpop.permute.xlu1 %2357  ;;  %v2360_v15 = vpop.permute.xlu0 %2359 }
 0xcda   : > { %v2387_v43 = vsel %vm2385_vm2, %v2356_v34, %v2358_v14  ;;  %v2388_v28 = vsel %vm2385_vm2, %v2358_v14, %v2360_v15 }
 0xcdb   : > { %v2411_v56 = vmul.f32 %v2387_v43, %v4201_v40  ;;  %v2412_v60 = vmul.f32 %v2388_v28, %v4198_v38  ;;  %v2392_v38 = vsel %vm2385_vm2, %v2370_v39, %v2372_v57 }
 0xcdc   : > { %v2416_v4 = vmul.f32 %v2392_v38, %v4216_v53 }
 0xcdd   : > { %v2366_v62 = vpop.permute.xlu1 %2365  ;;  %v2424_v10 = vadd.f32 %v2411_v56, %v2410_v23  ;;  %v2426_v12 = vsel %vm2425_vm3, %v2412_v60, 0.0 }
 0xcde   : > { %v2390_v13 = vsel %vm2385_vm2, %v2364_v35, %v2366_v62 }
 0xcdf   : > { %v2427_v48 = vadd.f32 %v2426_v12, %v2424_v10  ;;  %v2414_v47 = vmul.f32 %v2390_v13, %v4208_v11 }
 0xce0   : > { %v2374_v46 = vpop.permute.xlu0 %2373 }
 0xce1   : > { %v2393_v49 = vsel %vm2385_vm2, %v2372_v57, %v2374_v46  ;;  %v2368_v51 = vpop.permute.xlu1 %2367  ;;  %2428 = vadd.xlane.f32.xlu0 %v2427_v48  ;;  %v2430_v3 = vadd.f32 %v2414_v47, %v2413_v37 }
 0xce2   : > { %v2391_v40 = vsel %vm2385_vm2, %v2366_v62, %v2368_v51  ;;  %v2417_v55 = vmul.f32 %v2393_v49, %v4221_v54 }
 0xce3   : > { %v2415_v58 = vmul.f32 %v2391_v40, %v4205_v41 }
 0xce4   : > { %v2376_v0 = vpop.permute.xlu0 %2375  ;;  %v2435_v54 = vadd.f32 %v2417_v55, %v2416_v4 }
 0xce5   : > { %v2394_v11 = vsel %vm2385_vm2, %v2374_v46, %v2376_v0  ;;  %v2382_v5 = vpop.permute.xlu1 %2381  ;;  %v2431_v6 = vsel %vm2425_vm3, %v2415_v58, 0.0 }
 0xce6   : > { %v2418_v31 = vmul.f32 %v2394_v11, %v4218_v45  ;;  %v2396_v63 = vsel %vm2385_vm2, %v2380_v61, %v2382_v5  ;;  %v2432_v7 = vadd.f32 %v2431_v6, %v2430_v3 }
 0xce7   : > { %v2420_v41 = vmul.f32 %v2396_v63, %v4228_v24  ;;  %v3560_v63 = vld [vmem:[%s3866_s25 + $0x48] sm:$0xff]  }
 0xce8   : > { %2433 = vadd.xlane.f32.xlu1 %v2432_v7  ;;  %v2436_v9 = vsel %vm2425_vm3, %v2418_v31, 0.0  ;;  %v3561_v7 = vld [vmem:[%s3866_s25 + $0x8] sm:$0xff]  }
 0xce9   : > { %v2384_v53 = vpop.permute.xlu1 %2383  ;;  %v2437_v17 = vadd.f32 %v2436_v9, %v2435_v54  ;;  %v2440_v21 = vadd.f32 %v2420_v41, %v2419_v18  ;;  %v3563_v54 = vld [vmem:[%s3866_s25 + $0x10] sm:$0xff]   ;;  %v3565_v9 = vld [vmem:[%s3866_s25 + $0x18] sm:$0xff]  }
 0xcea   : > { %v2397_v20 = vsel %vm2385_vm2, %v2382_v5, %v2384_v53  ;;  %v3566_v53 = vld [vmem:[%s3866_s25 + $0x80] sm:$0xff]  }
 0xceb   : > { %v2421_v45 = vmul.f32 %v2397_v20, %v4225_v2  ;;  %2438 = vadd.xlane.f32.xlu0 %v2437_v17  ;;  %v3567_v17 = vld [vmem:[%s3866_s25 + $0x60] sm:$0xff]   ;;  %3341 = vmatprep.subr.bf16.mxu1 %v3566_v53  ;;  %v3569_v20 = vld [vmem:[%s3866_s25 + $0x88] sm:$0xff]  }
 0xcec   : > { %3342 = vmatpush3.bf16.msra.mxu1 %v3566_v53 }
 0xced   : > { %v2441_v8 = vsel %vm2425_vm3, %v2421_v45, 0.0  ;;  %3343 = vmatprep.subr.bf16.mxu1 %v3569_v20 }
 0xcee   : > { %v2442_v25 = vadd.f32 %v2441_v8, %v2440_v21  ;;  %v3571_v21 = vld [vmem:[%s3866_s25 + $0x28] sm:$0xff]   ;;  %v3572_v8 = vld [vmem:[%s3866_s25 + $0x90] sm:$0xff]  }
 0xcf0   : > { %2443 = vadd.xlane.f32.xlu0 %v2442_v25  ;;  %v3573_v25 = vld [vmem:[%s3866_s25 + $0x70] sm:$0xff]   ;;  %3344 = vmatpush3.bf16.msra.mxu1 %v3569_v20 }
 0xcf1   : > { %3345 = vmatprep.subr.bf16.mxu1 %v3572_v8 }
 0xcf4   : > { %3346 = vmatpush3.bf16.msra.mxu1 %v3572_v8 }
 0xd6e   : > { %v2429_v24 = vpop.xlane.xlu0 %2428 }
 0xd6f   : > { %v2446_v27 = vmul.f32 0.0029325513, %v2429_v24  ;;  %v3575_v24 = vld [vmem:[%s3866_s25 + $0x98] sm:$0xff]  }
 0xd70   : > { %3347 = vmatprep.subr.bf16.mxu1 %v3575_v24 }
 0xd71   : > { %v4273_v29 = vsub.f32 %v2410_v23, %v2446_v27  ;;  %v4275_v30 = vsub.f32 %v2411_v56, %v2446_v27  ;;  %v4277_v16 = vsub.f32 %v2412_v60, %v2446_v27  ;;  %v3576_v27 = vld [vmem:[%s3866_s25 + $0x78] sm:$0xff]   ;;  %3348 = vmatpush3.bf16.msra.mxu1 %v3575_v24 }
 0xd73   : > { %v2462_v1 = vmul.f32 %v4273_v29, %v4273_v29  ;;  %v2463_v2 = vmul.f32 %v4275_v30, %v4275_v30  ;;  %v2464_v32 = vmul.f32 %v4277_v16, %v4277_v16 }
 0xd75   : > { %v2434_v34 = vpop.xlane.xlu1 %2433  ;;  %v2474_v35 = vadd.f32 %v2463_v2, %v2462_v1  ;;  %v2475_v36 = vsel %vm2425_vm3, %v2464_v32, 0.0  ;;  %v3577_v1 = vld [vmem:[%s3866_s25 + $0x38] sm:$0xff]   ;;  %v3578_v2 = vld [vmem:[%s3866_s25 + $0xa0] sm:$0xff]   ;;  %v3579_v32 = vld [vmem:[%s3866_s25 + $0xa8] ss:$0 sps:$4 sm:$0x77]  }
 0xd76   : > { %v2447_v39 = vmul.f32 0.0029325513, %v2434_v34  ;;  %3349 = vmatprep.subr.bf16.mxu1 %v3578_v2  ;;  %v3729_v34 = vmov 65535  }
 0xd77   : > { %v2476_v57 = vadd.f32 %v2475_v36, %v2474_v35  ;;  %v2760_v35 = vsel %vm2758_vm4, 4294967295, %v3729_v34  ;;  %3350 = vmatpush3.bf16.msra.mxu1 %v3578_v2 }
 0xd78   : > { %v4286_v61 = vsub.f32 %v2413_v37, %v2447_v39  ;;  %v4288_v42 = vsub.f32 %v2414_v47, %v2447_v39  ;;  %v4290_v50 = vsub.f32 %v2415_v58, %v2447_v39  ;;  %v2439_v14 = vpop.xlane.xlu0 %2438  ;;  %v2761_v36 = vsel %vm2759_vm5, %v2760_v35, 0 }
 0xd79   : > { %v2448_v15 = vmul.f32 0.0029325513, %v2439_v14  ;;  %2477 = vadd.xlane.f32.xlu0 %v2476_v57  ;;  %v2763_v39 = vand.u32 %v3579_v32, %v2761_v36 }
 0xd7a   : > { %v2465_v43 = vmul.f32 %v4286_v61, %v4286_v61  ;;  %v2466_v28 = vmul.f32 %v4288_v42, %v4288_v42  ;;  %v2467_v23 = vmul.f32 %v4290_v50, %v4290_v50 }
 0xd7b   : > { %v4298_v56 = vsub.f32 %v2416_v4, %v2448_v15  ;;  %v4300_v60 = vsub.f32 %v2417_v55, %v2448_v15  ;;  %v4302_v62 = vsub.f32 %v2418_v31, %v2448_v15  ;;  %v3559_v31 = vld [vmem:[%s3866_s25] sm:$0xff]   ;;  %3351 = vmatprep.subr.bf16.mxu1 %v2763_v39 }
 0xd7c   : > { %v2479_v10 = vadd.f32 %v2466_v28, %v2465_v43  ;;  %v2480_v12 = vsel %vm2425_vm3, %v2467_v23, 0.0  ;;  %3258 = vmatpush3.bf16.msra.mxu0 %v3559_v31  ;;  %3352 = vmatpush3.bf16.msra.mxu1 %v2763_v39  ;;  %v2519_v43 = vlaneseq }
 0xd7d   : > { %v2444_v13 = vpop.xlane.xlu0 %2443  ;;  %v2468_v44 = vmul.f32 %v4298_v56, %v4298_v56  ;;  %v2469_v48 = vmul.f32 %v4300_v60, %v4300_v60  ;;  %v2470_v47 = vmul.f32 %v4302_v62, %v4302_v62  ;;  %3259 = vmatprep.subr.bf16.mxu0 %v3560_v63 }
 0xd7e   : > { %v2449_v46 = vmul.f32 0.0029325513, %v2444_v13  ;;  %v2481_v49 = vadd.f32 %v2480_v12, %v2479_v10  ;;  %v2520_v10 = vshrl.u32 %v2519_v43, 7 }
 0xd7f   : > { %v2484_v51 = vadd.f32 %v2469_v48, %v2468_v44  ;;  %v2485_v37 = vsel %vm2425_vm3, %v2470_v47, 0.0 }
 0xd80   : > { %v4312_v38 = vsub.f32 %v2419_v18, %v2449_v46  ;;  %v4314_v40 = vsub.f32 %v2420_v41, %v2449_v46  ;;  %v4316_v55 = vsub.f32 %v2421_v45, %v2449_v46  ;;  %2482 = vadd.xlane.f32.xlu1 %v2481_v49  ;;  %3260 = vmatpush3.bf16.msra.mxu0 %v3561_v7  ;;  %v3564_v41 = vld [vmem:[%s3866_s25 + $0x58] sm:$0xff]   ;;  %v3568_v18 = vld [vmem:[%s3866_s25 + $0x20] sm:$0xff]   ;;  %v3570_v45 = vld [vmem:[%s3866_s25 + $0x68] sm:$0xff]   ;;  %v2525_v47 = vsub.s32 1, %v2520_v10 }
 0xd81   : > { %v2486_v58 = vadd.f32 %v2485_v37, %v2484_v51  ;;  %3261 = vmatprep.subr.bf16.mxu0 %v3562_v33  ;;  %v2422_v46 = vld [vmem:[%s3856_s15] sm:$0x7]  ;;  %v2529_v49 = vsub.s32 2, %v2520_v10 }
 0xd82   : > { %v2471_v0 = vmul.f32 %v4312_v38, %v4312_v38  ;;  %v2472_v3 = vmul.f32 %v4314_v40, %v4314_v40  ;;  %v2473_v4 = vmul.f32 %v4316_v55, %v4316_v55 }
 0xd83   : > { %2487 = vadd.xlane.f32.xlu0 %v2486_v58  ;;  %v2521_v58 = vsub.s32 0, %v2520_v10  ;;  %v2530_v31 = vrot.slane %v2422_v46, %v2529_v49 }
 0xd84   : > { %v2489_v11 = vadd.f32 %v2472_v3, %v2471_v0  ;;  %v2490_v5 = vsel %vm2425_vm3, %v2473_v4, 0.0  ;;  %3262 = vmatpush3.bf16.msra.mxu0 %v3563_v54  ;;  %v2526_v4 = vrot.slane %v2422_v46, %v2525_v47 }
 0xd85   : > { %3263 = vmatprep.subr.bf16.mxu0 %v3564_v41  ;;  %v2522_v63 = vrot.slane %v2422_v46, %v2521_v58 }
 0xd86   : > { %v2491_v6 = vadd.f32 %v2490_v5, %v2489_v11  ;;  %v2423_v5 = vld [vmem:[%s3861_s24] sm:$0x7] }
 0xd87   : > { %v2554_v54 = vrot.slane %v2423_v5, %v2525_v47 }
 0xd88   : > { %2492 = vadd.xlane.f32.xlu1 %v2491_v6  ;;  %3264 = vmatpush3.bf16.msra.mxu0 %v3565_v9  ;;  %v2550_v9 = vrot.slane %v2423_v5, %v2521_v58 }
 0xd89   : > { %3265 = vmatprep.subr.bf16.mxu0 %v3567_v17  ;;  %v2558_v17 = vrot.slane %v2423_v5, %v2529_v49 }
 0xd8c   : > { %3266 = vmatpush3.bf16.msra.mxu0 %v3568_v18 }
 0xd8d   : > { %3267 = vmatprep.subr.bf16.mxu0 %v3570_v45 }
 0xd90   : > { %3268 = vmatpush3.bf16.msra.mxu0 %v3571_v21 }
 0xd91   : > { %3269 = vmatprep.subr.bf16.mxu0 %v3573_v25 }
 0xd94   : > { %3270 = vmatpush3.bf16.msra.mxu0 %v3574_v26 }
 0xd95   : > { %3271 = vmatprep.subr.bf16.mxu0 %v3576_v27 }
 0xd98   : > { %3272 = vmatpush3.bf16.msra.mxu0 %v3577_v1 }
 0xe06   : > { %v2478_v57 = vpop.xlane.xlu0 %2477 }
 0xe07   : > { %v2494_v14 = vmul.f32 0.0029325513, %v2478_v57 }
 0xe09   : > { %v2498_v15 = vadd.f32 1e-05, %v2494_v14 }
 0xe0b   : > { %3660 = vrsqrt.f32 %v2498_v15 }
 0xe0d   : > { %v2483_v28 = vpop.xlane.xlu1 %2482 }
 0xe0e   : > { %v2495_v23 = vmul.f32 0.0029325513, %v2483_v28 }
 0xe10   : > { %v2499_v12 = vadd.f32 1e-05, %v2495_v23  ;;  %v2488_v13 = vpop.xlane.xlu0 %2487 }
 0xe11   : > { %v2496_v44 = vmul.f32 0.0029325513, %v2488_v13 }
 0xe12   : > { %3662 = vrsqrt.f32 %v2499_v12 }
 0xe13   : > { %v2500_v48 = vadd.f32 1e-05, %v2496_v44 }
 0xe15   : > { %v3661_v51 = vpop.eup %3660  ;;  %3664 = vrsqrt.f32 %v2500_v48  ;;  %v2493_v37 = vpop.xlane.xlu1 %2492 }
 0xe16   : > { %v2497_v0 = vmul.f32 0.0029325513, %v2493_v37  ;;  %v2507_v3 = vmul.f32 %v3661_v51, %v4275_v30  ;;  %v2508_v6 = vmul.f32 %v3661_v51, %v4277_v16  ;;  %v2506_v7 = vmul.f32 %v3661_v51, %v4273_v29 }
 0xe18   : > { %v2501_v11 = vadd.f32 1e-05, %v2497_v0  ;;  %v2535_v33 = vmul.f32 %v2526_v4, %v2507_v3  ;;  %v2536_v53 = vmul.f32 %v2530_v31, %v2508_v6  ;;  %v2534_v45 = vmul.f32 %v2522_v63, %v2506_v7 }
 0xe1a   : > { %3666 = vrsqrt.f32 %v2501_v11  ;;  %v2563_v8 = vadd.f32 %v2554_v54, %v2535_v33  ;;  %v2564_v29 = vadd.f32 %v2558_v17, %v2536_v53 }
 0xe1c   : > { %v3663_v41 = vpop.eup %3662 }
 0xe1d   : > { %v2510_v18 = vmul.f32 %v3663_v41, %v4288_v42  ;;  %v2511_v30 = vmul.f32 %v3663_v41, %v4290_v50  ;;  %v2509_v20 = vmul.f32 %v3663_v41, %v4286_v61  ;;  %v2562_v42 = vadd.f32 %v2550_v9, %v2534_v45 }
 0xe1f   : > { %v3665_v21 = vpop.eup %3664  ;;  %v2538_v16 = vmul.f32 %v2526_v4, %v2510_v18  ;;  %v2539_v25 = vmul.f32 %v2530_v31, %v2511_v30  ;;  %v2537_v26 = vmul.f32 %v2522_v63, %v2509_v20 }
 0xe20   : > { %v2513_v24 = vmul.f32 %v3665_v21, %v4300_v60  ;;  %v2514_v27 = vmul.f32 %v3665_v21, %v4302_v62  ;;  %v2512_v1 = vmul.f32 %v3665_v21, %v4298_v56 }
 0xe21   : > { %v2566_v2 = vadd.f32 %v2554_v54, %v2538_v16  ;;  %v2567_v32 = vadd.f32 %v2558_v17, %v2539_v25  ;;  %v2565_v34 = vadd.f32 %v2550_v9, %v2537_v26 }
 0xe22   : > { %v2541_v39 = vmul.f32 %v2526_v4, %v2513_v24  ;;  %v2542_v57 = vmul.f32 %v2530_v31, %v2514_v27  ;;  %v2540_v14 = vmul.f32 %v2522_v63, %v2512_v1 }
 0xe23   : > { %v2575_v50 = vpack.c.bf16 %v2566_v2, %v2563_v8  ;;  %v2576_v35 = vpack.c.bf16 %v2567_v32, %v2564_v29  ;;  %v2574_v61 = vpack.c.bf16 %v2565_v34, %v2562_v42 }
 0xe24   : > { %v3667_v36 = vpop.eup %3666  ;;  %v2569_v23 = vadd.f32 %v2554_v54, %v2541_v39  ;;  %v2570_v10 = vadd.f32 %v2558_v17, %v2542_v57  ;;  %v2568_v44 = vadd.f32 %v2550_v9, %v2540_v14 }
 0xe25   : > { %2797 = vmatprep.mubr.bf16.mxu0 %v2575_v50  ;;  %3353 = vmatprep.mubr.msk.bf16.mxu1 %vm2425_vm3, %v2576_v35  ;;  %v2516_v60 = vmul.f32 %v3667_v36, %v4314_v40  ;;  %v2517_v62 = vmul.f32 %v3667_v36, %v4316_v55  ;;  %v2515_v56 = vmul.f32 %v3667_v36, %v4312_v38 }
 0xe26   : > { %2798 = vmatmul.mubr.bf16.vlgmr.msra.gmra.mrb[36].mxu0 %v2574_v61 }
 0xe27   : > { %v2544_v15 = vmul.f32 %v2526_v4, %v2516_v60  ;;  %v2545_v43 = vmul.f32 %v2530_v31, %v2517_v62  ;;  %v2543_v28 = vmul.f32 %v2522_v63, %v2515_v56 }
 0xe29   : > { %v2572_v12 = vadd.f32 %v2554_v54, %v2544_v15  ;;  %v2573_v13 = vadd.f32 %v2558_v17, %v2545_v43  ;;  %v2571_v48 = vadd.f32 %v2550_v9, %v2543_v28 }
 0xe2b   : > { %v2578_v47 = vpack.c.bf16 %v2572_v12, %v2569_v23  ;;  %v2579_v46 = vpack.c.bf16 %v2573_v13, %v2570_v10  ;;  %v2577_v49 = vpack.c.bf16 %v2571_v48, %v2568_v44 }
 0xe2d   : > { %2805 = vmatprep.mubr.bf16.mxu0 %v2578_v47  ;;  %3354 = vmatmul.mubr.msk.bf16.vlgmr.msra.gmra.mrb[52].mxu1 %vm2425_vm3, %v2579_v46 }
 0xe2e   : > { %2806 = vmatmul.mubr.bf16.gmra.mrb[40].mxu0 %v2577_v49 }
 0xef9   : > { %v3273_v40 = vpop.f32.mrb[36].mxu0 }
 0xefa   : > { %v3274_v55 = vpop.f32.mrb[37].mxu0 }
 0xefb   : > { %v3275_v38 = vadd.f32 %v3274_v55, %v3273_v40  ;;  %v3276_v51 = vpop.f32.mrb[38].mxu0 }
 0xefc   : > { %v3277_v37 = vpop.f32.mrb[39].mxu0 }
 0xefd   : > { %v3278_v58 = vadd.f32 %v3277_v37, %v3276_v51 }
 0xf00   : > { %v3355_v0 = vpop.f32.mrb[52].mxu1 }
 0xf01   : > { %v3279_v3 = vpop.f32.mrb[40].mxu0  ;;  %v2848_v4 = vpop.f32.mrb[53].mxu1 }
 0xf02   : > { %v2849_v11 = vadd.f32 %v3275_v38, %v2848_v4  ;;  %v3280_v5 = vpop.f32.mrb[41].mxu0  ;;  %v3356_v6 = vpop.f32.mrb[54].mxu1 }
 0xf03   : > { %v3281_v31 = vadd.f32 %v3280_v5, %v3279_v3  ;;  %v3282_v63 = vpop.f32.mrb[42].mxu0  ;;  %v2851_v7 = vpop.f32.mrb[55].mxu1 }
 0xf04   : > { %v2863_v33 = vadd.f32 %v2849_v11, %v4088_v19  ;;  %v2852_v54 = vadd.f32 %v3278_v58, %v2851_v7  ;;  %v3283_v41 = vpop.f32.mrb[43].mxu0 }
 0xf05   : > { %v2857_v9 = vadd.f32 %v3355_v0, %v3281_v31  ;;  %v3284_v53 = vadd.f32 %v3283_v41, %v3282_v63  ;;  %2874 = sbr.rel (%p3207_p6) target bundleno = 3852 (0xf0c), region = 72 }
 0xf06   : > { %2867 = vst [vmem:[#allocation2] sm:$0xff] %v2863_v33  ;;  %v2864_v17 = vadd.f32 %v2852_v54, %v4090_v22  ;;  %2875 = vst [vmem:[#allocation4] sm:$0xff] (!%p3207_p6), %v2863_v33 }
 0xf07   : > { %v2865_v18 = vadd.f32 %v2857_v9, %v4110_v52  ;;  %v2860_v30 = vadd.f32 %v3356_v6, %v3284_v53 }
 0xf08   : > { %2868 = vst [vmem:[#allocation2 + $0x8] sm:$0xff] %v2864_v17  ;;  %2876 = vst [vmem:[#allocation4 + $0x8] sm:$0xff] (!%p3207_p6), %v2864_v17 }
 0xf09   : > { %2869 = vst [vmem:[#allocation2 + $0x10] sm:$0xff] %v2865_v18  ;;  %v2866_v20 = vadd.f32 %v2860_v30, %v4116_v59  ;;  %2877 = vst [vmem:[#allocation4 + $0x10] sm:$0xff] (!%p3207_p6), %v2865_v18 }
 0xf0b   : > { %2870 = vst [vmem:[#allocation2 + $0x18] sm:$0xff] %v2866_v20  ;;  %2878 = vst [vmem:[#allocation4 + $0x18] sm:$0xff] (!%p3207_p6), %v2866_v20 }
 0xf0c PF: > { %s4426_s22 = sadd.s32 4294967295, %s3723_s19   ;;  %s3730_s15 = smov [#allocation4]  }
 0xf0d   : > { %p4369_p7 = scmp.eq.s32.totalorder %s4426_s22, 1  ;;  %s2888_s24 = sshll.u32 %s3730_s15, 4  ;;  %s2889_s24 = int_to_ptr.vmem [resolvable:$true] %s2888_s24 }
 0xf0e   : > { %s3671_s25 = scalar_lea.vmem %s2889_s24, 512  ;;  %p3678_p11 = scmp.lt.s32.totalorder %s2889_s24, %s2889_s24 }
 0xf0f   : > { %p3672_p8 = scmp.ne.s32.totalorder %s2889_s24, %s3671_s25  ;;  %p3679_p12 = scmp.lt.s32.totalorder %s3671_s25, %s3671_s25 }
 0xf11   : > { %p3673_p9 = pnand %p3672_p8, %p4369_p7  ;;  %p3680_p13 = por %p3679_p12, %p3678_p11 }
 0xf13   : > { %p3674_p10 = pneg %p3673_p9 }
 0xf15   : > { %p3681_p0 = pnand %p3680_p13, %p3674_p10 }
 0xf17   : > { %3684 = shalt.err (!%p3681_p0)
}
 0xf18   : > { %s4428_s30 = sld [smem:[#allocation10_spill]] }
 0xf1e   : > { %s3685_s12 = scalar_lea.hbm %s4428_s30, 512 }
 0xf1f   : > { %p3686_p1 = scmp.ne.s32.totalorder %s4428_s30, %s3685_s12  ;;  %p3691_p4 = scmp.lt.u32.totalorder %s3685_s12, %s4428_s30 }
 0xf21   : > { %p3687_p2 = pnand %p3686_p1, %p4369_p7 }
 0xf23   : > { %p3688_p3 = pneg %p3687_p2 }
 0xf25   : > { %p3693_p5 = pnand %p3691_p4, %p3688_p3 }
 0xf27   : > { %3696 = shalt.err (!%p3693_p5)
}
 0xf28   : > { %s3731_s4 = smov 128   ;;  %s3732_s21 = smov 8  }
 0xf29   : > { %3361 = dma.vmem_to_hbm [thread:$0]  (%p4369_p7), %s2889_s24, 512, %s4428_s30, [#allocation5], %s3731_s4, %s3731_s4, %s3732_s21  }
 0xf2a   : > { %3710 = dma.done.wait (%p4369_p7), [#allocation5], 512  }
 0xf2b   : > { %3712 = vsyncadd (%p4369_p7), [#allocation5], 4294966784 }
 0xf2c PF: > { %s22_s19 = sadd.s32 1, %s3723_s19   ;;  %s4429_s17 = sld [smem:[#allocation7_spill]] }
 0xf2d   : > { %p19_p6 = scmp.ge.s32.totalorder %s22_s19, 4   ;;  %s4430_s18 = sld [smem:[#allocation8_spill]] }
 0xf2f   :  { %21 = sbr.rel (!%p19_p6) target bundleno = 5 (0x5), region = 130 }
 0xf36   :  { %2904 = vsyncpa [#allocation5], 1 }
 0xf37   :  { %2906 = vsyncpa [#allocation5 + $0x1], 1 }

</bundles_post_ra>
